<compile_context>
chip_gen: v7x
topology: tpu7x:2x2x1
jax: 0.10.0
libtpu: 0.0.40
codegen_flags: <defaults>
</compile_context>

<pallas_src>
import functools

import jax
import jax.numpy as jnp
from jax.experimental import pallas as pl
from jax.experimental.pallas import tpu as pltpu

HIDDEN = 32        # small stand-in for the module's hidden_dim=256
N_MFCC = 20        # input_dim
CHARACTERS = ['<blank>', ' ', "'", '.', ',', '!', '?'] + list('abcdefghijklmnopqrstuvwxyz')
OUTPUT_DIM = len(CHARACTERS)   # 33
NEG_INF = -1e30


# ----------------------------- fused forward kernel -------------------------

def _asr_kernel(mask_ref, x_ref,
                wih0_ref, whh0_ref, b0_ref,
                wih1_ref, whh1_ref, b1_ref,
                wout_ref, bout_ref,
                o_ref,
                xg_scr, h0_scr, h1_scr,
                *, T, B, H, n_valid):
    """Entire SimpleASR forward for one (padded) batch, resident in VMEM.

    mask_ref : (T*B, 1) f32   1.0 where t < length[b] (row = t*B + b), else 0
    x_ref    : (T*B, F) f32   time-major-flattened MFCC input
    wihK_ref : (Din, 8H) bf16 x->gate weights, both directions, gate order
                              per direction [i, f, o, g]
    whhK_ref : (2H, 8H) f32   block-diagonal recurrent weights (fwd | bwd)
    bK_ref   : (1, 8H) f32    combined biases
    wout_ref : (2H, Dpad) f32 output projection (vocab zero-padded to 128)
    bout_ref : (1, Dpad) f32
    o_ref    : (T*B, Dpad)    log-probabilities (padded vocab masked)
    """
    G = 4 * H

    def run_layer(x_bf16, wih_ref, whh_ref, b_ref, hout_scr):
        # Prologue: x-gates for the whole time block and both directions in
        # ONE bf16 MXU GEMM (independent of the recurrence), f32 accumulate.
        xg_scr[...] = (jnp.dot(x_bf16, wih_ref[...],
                               preferred_element_type=jnp.float32)
                       + b_ref[...])
        w_blk = whh_ref[...]                       # (2H, 8H) block-diagonal

        def cell(gates, c):
            # gate column order per direction: [i, f, o, g]
            s = jax.nn.sigmoid(gates[:, 0:3 * H])          # one EUP group
            g_g = jnp.tanh(gates[:, 3 * H:4 * H])           # one tanh
            c_new = s[:, H:2 * H] * c + s[:, 0:H] * g_g
            h_new = s[:, 2 * H:3 * H] * jnp.tanh(c_new)
            return h_new, c_new

        def step(si, carry):
            h_f, c_f, h_b, c_b = carry
            row_f = pl.multiple_of(si * B, 8)               # fwd walks 0..T-1
            row_b = pl.multiple_of((T - 1 - si) * B, 8)     # bwd walks T-1..0

            # single block-diagonal recurrent matmul for both directions
            rec = jnp.dot(jnp.concatenate([h_f, h_b], axis=1), w_blk,
                          preferred_element_type=jnp.float32)   # (B, 8H)
            g_f = xg_scr[pl.ds(row_f, B), 0:G] + rec[:, 0:G]
            g_b = xg_scr[pl.ds(row_b, B), G:2 * G] + rec[:, G:2 * G]
            hf_new, cf_new = cell(g_f, c_f)
            hb_new, cb_new = cell(g_b, c_b)

            # precomputed packed-sequence validity mask (t < length)
            m_f = mask_ref[pl.ds(row_f, B), :]              # (B, 1) {0, 1}
            m_b = mask_ref[pl.ds(row_b, B), :]
            v_f = m_f > 0.0
            v_b = m_b > 0.0
            h_f = jnp.where(v_f, hf_new, h_f)
            c_f = jnp.where(v_f, cf_new, c_f)
            h_b = jnp.where(v_b, hb_new, h_b)
            c_b = jnp.where(v_b, cb_new, c_b)

            # padded positions emit exactly 0 (pad_packed_sequence behaviour)
            hout_scr[pl.ds(row_f, B), 0:H] = m_f * hf_new
            hout_scr[pl.ds(row_b, B), H:2 * H] = m_b * hb_new
            return h_f, c_f, h_b, c_b

        z = jnp.zeros((B, H), jnp.float32)
        jax.lax.fori_loop(0, T, step, (z, z, z, z))

    # layer 0 (input Linear folded into wih0); layer 1 reads layer-0's output
    # from VMEM scratch -- no HBM round trip between layers.
    run_layer(x_ref[...].astype(jnp.bfloat16), wih0_ref, whh0_ref, b0_ref,
              h0_scr)
    run_layer(h0_scr[...].astype(jnp.bfloat16), wih1_ref, whh1_ref, b1_ref,
              h1_scr)

    # fused output projection + log-softmax (lane-dense padded vocab)
    logits = (jnp.dot(h1_scr[...], wout_ref[...],
                      preferred_element_type=jnp.float32) + bout_ref[...])
    cols = jax.lax.broadcasted_iota(jnp.int32, logits.shape, 1)
    logits = jnp.where(cols < n_valid, logits, NEG_INF)     # mask padded vocab
    mx = jnp.max(logits, axis=-1, keepdims=True)
    z = logits - mx
    lse = jnp.log(jnp.sum(jnp.exp(z), axis=-1, keepdims=True))
    o_ref[...] = z - lse


def asr_fused_call(fused, mask, x_tm, *, T, B, H):
    """mask: (T*B, 1) f32; x_tm: (T*B, F) f32 -> (T*B, Dpad) log-probs."""
    (wih0, whh0, b0), (wih1, whh1, b1) = fused['layers']
    w_out, b_out = fused['w_out'], fused['b_out']
    F = x_tm.shape[1]
    Dpad = w_out.shape[1]
    G8 = 8 * H
    kernel = functools.partial(_asr_kernel, T=T, B=B, H=H, n_valid=OUTPUT_DIM)
    return pl.pallas_call(
        kernel,
        out_shape=jax.ShapeDtypeStruct((T * B, Dpad), jnp.float32),
        grid=(1,),
        in_specs=[
            pl.BlockSpec((T * B, 1), lambda i: (0, 0)),       # mask
            pl.BlockSpec((T * B, F), lambda i: (0, 0)),       # x (time-major)
            pl.BlockSpec((F, G8), lambda i: (0, 0)),          # wih0 (bf16)
            pl.BlockSpec((2 * H, G8), lambda i: (0, 0)),      # whh0 blk-diag
            pl.BlockSpec((1, G8), lambda i: (0, 0)),          # b0
            pl.BlockSpec((2 * H, G8), lambda i: (0, 0)),      # wih1 (bf16)
            pl.BlockSpec((2 * H, G8), lambda i: (0, 0)),      # whh1 blk-diag
            pl.BlockSpec((1, G8), lambda i: (0, 0)),          # b1
            pl.BlockSpec((2 * H, Dpad), lambda i: (0, 0)),    # w_out (padded)
            pl.BlockSpec((1, Dpad), lambda i: (0, 0)),        # b_out
        ],
        out_specs=pl.BlockSpec((T * B, Dpad), lambda i: (0, 0)),
        scratch_shapes=[
            pltpu.VMEM((T * B, G8), jnp.float32),      # x-gates (reused/layer)
            pltpu.VMEM((T * B, 2 * H), jnp.float32),   # layer-0 output
            pltpu.VMEM((T * B, 2 * H), jnp.float32),   # layer-1 output
        ],
        compiler_params=pltpu.CompilerParams(
            dimension_semantics=("arbitrary",),
            vmem_limit_bytes=32 * 1024 * 1024),
    )(mask, x_tm, wih0, whh0, b0, wih1, whh1, b1, w_out, b_out)


# ------------------------------ parameters ----------------------------------

def init_params(key, input_dim, hidden_dim, output_dim, num_layers=2):
    """PyTorch-layout parameters (weights stored pre-transposed: (in, out));
    gate order along the 4H axis is PyTorch's [i, f, g, o]."""
    keys = iter(jax.random.split(key, 64))

    def nrm(shape, scale=0.1):
        return scale * jax.random.normal(next(keys), shape, jnp.float32)

    params = {
        'w_in': nrm((input_dim, hidden_dim)),
        'b_in': nrm((hidden_dim,)),
        'w_out': nrm((2 * hidden_dim, output_dim)),
        'b_out': nrm((output_dim,)),
        'lstm': [],
    }
    for layer in range(num_layers):
        d_in = hidden_dim if layer == 0 else 2 * hidden_dim
        dirs = []
        for _ in range(2):   # forward, backward
            dirs.append({
                'w_ih': nrm((d_in, 4 * hidden_dim)),        # W_ih^T
                'w_hh': nrm((hidden_dim, 4 * hidden_dim)),  # W_hh^T
                'b':    nrm((4 * hidden_dim,)),             # b_ih + b_hh
            })
        params['lstm'].append(dirs)
    return params


def _reorder_gates(w, H):
    """Permute last-axis gate columns PyTorch [i, f, g, o] -> [i, f, o, g]."""
    return jnp.concatenate(
        [w[..., 0:2 * H], w[..., 3 * H:4 * H], w[..., 2 * H:3 * H]], axis=-1)


def fuse_params(params):
    """Kernel-ready parameters:
       * fold the input projection into layer-0 x-gate weights (exact: no
         nonlinearity between the two Linears in the module),
       * reorder gate columns to [i, f, o, g] (grouped sigmoid / tanh),
       * concatenate both directions' x-gate weights (stored bf16),
       * build the (2H, 8H) block-diagonal recurrent weight per layer,
       * pad the output projection to a lane-dense 128-wide vocab."""
    H = params['w_in'].shape[1]
    fused_layers = []
    for li, dirs in enumerate(params['lstm']):
        wih, bias = [], []
        for p in dirs:
            if li == 0:
                w = params['w_in'] @ p['w_ih']               # (F, 4H)
                b = params['b_in'] @ p['w_ih'] + p['b']       # (4H,)
            else:
                w = p['w_ih']
                b = p['b']
            wih.append(_reorder_gates(w, H))
            bias.append(_reorder_gates(b, H))
        whh_f = _reorder_gates(dirs[0]['w_hh'], H)            # (H, 4H)
        whh_b = _reorder_gates(dirs[1]['w_hh'], H)
        whh_blk = jnp.zeros((2 * H, 8 * H), jnp.float32)
        whh_blk = whh_blk.at[0:H, 0:4 * H].set(whh_f)
        whh_blk = whh_blk.at[H:2 * H, 4 * H:8 * H].set(whh_b)
        fused_layers.append((
            jnp.concatenate(wih, axis=1).astype(jnp.bfloat16),  # (Din, 8H)
            whh_blk,                                            # (2H, 8H)
            jnp.concatenate(bias)[None, :].astype(jnp.float32), # (1, 8H)
        ))
    d_out = params['w_out'].shape[1]
    d_pad = max(128, -(-d_out // 128) * 128)
    w_out = jnp.zeros((params['w_out'].shape[0], d_pad),
                      jnp.float32).at[:, :d_out].set(params['w_out'])
    b_out = jnp.zeros((1, d_pad), jnp.float32).at[:, :d_out].set(params['b_out'])
    return {'layers': fused_layers, 'w_out': w_out, 'b_out': b_out}


# ------------------------------- forward ------------------------------------

def simple_asr_forward(fused, x, input_lengths):
    """x: (B, T, input_dim) f32; input_lengths: (B,) int -> (B, T, D_out).

    Note: the pad_packed_sequence truncation to max(input_lengths) is skipped
    to avoid a host sync (fully jittable); rows past each length are
    log_softmax(output bias), matching fc applied to zero-padded outputs.
    """
    B, T, F = x.shape
    H = fused['layers'][0][1].shape[0] // 2
    Bp = ((B + 7) // 8) * 8          # pad batch to a full sublane tile
    x = jnp.pad(x, ((0, Bp - B), (0, 0), (0, 0)))
    lengths = jnp.pad(input_lengths.astype(jnp.int32), (0, Bp - B))

    # packed-sequence validity mask, computed ONCE (row = t*Bp + b)
    mask = (jnp.arange(T, dtype=jnp.int32)[:, None] < lengths[None, :])
    mask = mask.astype(jnp.float32).reshape(T * Bp, 1)

    # single entry transpose into the time-major-flattened layout
    x_tm = jnp.transpose(x, (1, 0, 2)).reshape(T * Bp, F)

    logp = asr_fused_call(fused, mask, x_tm, T=T, B=Bp, H=H)
    logp = logp[:, :OUTPUT_DIM].reshape(T, Bp, OUTPUT_DIM)
    return jnp.transpose(logp, (1, 0, 2))[:B]


if __name__ == "__main__":
    B, T = 2, 8
    key = jax.random.PRNGKey(0)
    kp, kx = jax.random.split(key)
    params = init_params(kp, N_MFCC, HIDDEN, OUTPUT_DIM)
    fused = fuse_params(params)

    x = jax.random.normal(kx, (B, T, N_MFCC), dtype=jnp.float32)
    input_lengths = jnp.array([T, 5], dtype=jnp.int32)

    fwd = jax.jit(simple_asr_forward)
    log_probs = fwd(fused, x, input_lengths)
    jax.block_until_ready(log_probs)

    assert log_probs.shape == (B, T, OUTPUT_DIM)
    assert bool(jnp.all(jnp.isfinite(log_probs)))
    # every row is a valid log-prob distribution
    row_sums = jnp.exp(log_probs).sum(axis=-1)
    assert bool(jnp.all(jnp.abs(row_sums - 1.0) < 1e-3))
    print("KERNEL_OK")
</pallas_src>

<mosaic_0001>
module attributes {stable_mosaic.version = 11 : i64} {
  func.func @_asr_kernel(%arg0: i32, %arg1: memref<64x1xf32, #tpu.memory_space<vmem>>, %arg2: memref<64x20xf32, #tpu.memory_space<vmem>>, %arg3: memref<20x256xbf16, #tpu.memory_space<vmem>>, %arg4: memref<64x256xf32, #tpu.memory_space<vmem>>, %arg5: memref<1x256xf32, #tpu.memory_space<vmem>>, %arg6: memref<64x256xbf16, #tpu.memory_space<vmem>>, %arg7: memref<64x256xf32, #tpu.memory_space<vmem>>, %arg8: memref<1x256xf32, #tpu.memory_space<vmem>>, %arg9: memref<64x128xf32, #tpu.memory_space<vmem>>, %arg10: memref<1x128xf32, #tpu.memory_space<vmem>>, %arg11: memref<64x128xf32, #tpu.memory_space<vmem>>, %arg12: memref<64x256xf32, #tpu.memory_space<vmem>>, %arg13: memref<64x64xf32, #tpu.memory_space<vmem>>, %arg14: memref<64x64xf32, #tpu.memory_space<vmem>>) attributes {dimension_semantics = [#tpu.dimension_semantics<arbitrary>], iteration_bounds = array<i64: 1>, scalar_prefetch = 0 : i64, scratch_operands = 3 : i64, tpu.core_type = #tpu.core_type<tc>, window_params = [{pipeline_mode = #tpu.pipeline_mode<synchronous>, transform_indices = @transform_0, window_bounds = array<i64: 64, 1>}, {pipeline_mode = #tpu.pipeline_mode<synchronous>, transform_indices = @transform_1, window_bounds = array<i64: 64, 20>}, {pipeline_mode = #tpu.pipeline_mode<synchronous>, transform_indices = @transform_2, window_bounds = array<i64: 20, 256>}, {pipeline_mode = #tpu.pipeline_mode<synchronous>, transform_indices = @transform_3, window_bounds = array<i64: 64, 256>}, {pipeline_mode = #tpu.pipeline_mode<synchronous>, transform_indices = @transform_4, window_bounds = array<i64: 1, 256>}, {pipeline_mode = #tpu.pipeline_mode<synchronous>, transform_indices = @transform_5, window_bounds = array<i64: 64, 256>}, {pipeline_mode = #tpu.pipeline_mode<synchronous>, transform_indices = @transform_6, window_bounds = array<i64: 64, 256>}, {pipeline_mode = #tpu.pipeline_mode<synchronous>, transform_indices = @transform_7, window_bounds = array<i64: 1, 256>}, {pipeline_mode = #tpu.pipeline_mode<synchronous>, transform_indices = @transform_8, window_bounds = array<i64: 64, 128>}, {pipeline_mode = #tpu.pipeline_mode<synchronous>, transform_indices = @transform_9, window_bounds = array<i64: 1, 128>}, {pipeline_mode = #tpu.pipeline_mode<synchronous>, transform_indices = @transform_10, window_bounds = array<i64: 64, 128>}]} {
    %c0 = arith.constant 0 : index
    %c0_0 = arith.constant 0 : index
    %0 = vector.load %arg2[%c0, %c0_0] : memref<64x20xf32, #tpu.memory_space<vmem>>, vector<64x20xf32>
    %1 = arith.truncf %0 : vector<64x20xf32> to vector<64x20xbf16>
    %c0_1 = arith.constant 0 : index
    %c0_2 = arith.constant 0 : index
    %2 = vector.load %arg3[%c0_1, %c0_2] : memref<20x256xbf16, #tpu.memory_space<vmem>>, vector<20x256xbf16>
    %cst = arith.constant dense<0.000000e+00> : vector<64x256xf32>
    %3 = tpu.matmul %1, %2, %cst {dimension_numbers = #tpu.dot_dimension_numbers<[1], [0], [0], [1], [0, 0, 1, 1], [], []>} : vector<64x20xbf16>, vector<20x256xbf16>, vector<64x256xf32> -> vector<64x256xf32>
    %c0_3 = arith.constant 0 : index
    %c0_4 = arith.constant 0 : index
    %4 = vector.load %arg5[%c0_3, %c0_4] : memref<1x256xf32, #tpu.memory_space<vmem>>, vector<1x256xf32>
    %5 = vector.broadcast %4 : vector<1x256xf32> to vector<64x256xf32>
    %6 = arith.addf %3, %5 : vector<64x256xf32>
    %c0_5 = arith.constant 0 : index
    %c0_6 = arith.constant 0 : index
    %7 = vector.load %arg12[%c0_5, %c0_6] : memref<64x256xf32, #tpu.memory_space<vmem>>, vector<64x256xf32>
    tpu.vector_store %arg12[%c0_5, %c0_6], %6 {strides = array<i32>} : memref<64x256xf32, #tpu.memory_space<vmem>>, vector<64x256xf32>,
    %c0_7 = arith.constant 0 : index
    %c0_8 = arith.constant 0 : index
    %8 = vector.load %arg4[%c0_7, %c0_8] : memref<64x256xf32, #tpu.memory_space<vmem>>, vector<64x256xf32>
    %cst_9 = arith.constant 0.000000e+00 : f32
    %9 = vector.broadcast %cst_9 : f32 to vector<8x32xf32>
    %c0_i32 = arith.constant 0 : i32
    %c8_i32 = arith.constant 8 : i32
    %10 = arith.addi %c0_i32, %c8_i32 : i32
    %c1_i32 = arith.constant 1 : i32
    %11:4 = scf.for %arg15 = %c0_i32 to %10 step %c1_i32 iter_args(%arg16 = %9, %arg17 = %9, %arg18 = %9, %arg19 = %9) -> (vector<8x32xf32>, vector<8x32xf32>, vector<8x32xf32>, vector<8x32xf32>)  : i32 {
      %c8_i32_39 = arith.constant 8 : i32
      %46 = arith.muli %arg15, %c8_i32_39 : i32
      %47 = tpu.assume_multiple %46, 8 : i32
      %c7_i32 = arith.constant 7 : i32
      %48 = arith.subi %c7_i32, %arg15 : i32
      %c8_i32_40 = arith.constant 8 : i32
      %49 = arith.muli %48, %c8_i32_40 : i32
      %50 = tpu.assume_multiple %49, 8 : i32
      %51 = tpu.concatenate %arg16, %arg18 in 1 : vector<8x32xf32>, vector<8x32xf32> -> vector<8x64xf32>
      %cst_41 = arith.constant dense<0.000000e+00> : vector<8x256xf32>
      %52 = tpu.matmul %51, %8, %cst_41 {dimension_numbers = #tpu.dot_dimension_numbers<[1], [0], [0], [1], [0, 0, 1, 1], [], []>} : vector<8x64xf32>, vector<64x256xf32>, vector<8x256xf32> -> vector<8x256xf32>
      %53 = arith.index_cast %47 : i32 to index
      %c0_42 = arith.constant 0 : index
      %54 = vector.load %arg12[%53, %c0_42] : memref<64x256xf32, #tpu.memory_space<vmem>>, vector<8x128xf32>
      %55 = vector.extract_strided_slice %52 {offsets = [0, 0], sizes = [8, 128], strides = [1, 1]} : vector<8x256xf32> to vector<8x128xf32>
      %56 = arith.addf %54, %55 : vector<8x128xf32>
      %57 = arith.index_cast %50 : i32 to index
      %c128 = arith.constant 128 : index
      %58 = vector.load %arg12[%57, %c128] : memref<64x256xf32, #tpu.memory_space<vmem>>, vector<8x128xf32>
      %59 = vector.extract_strided_slice %52 {offsets = [0, 128], sizes = [8, 128], strides = [1, 1]} : vector<8x256xf32> to vector<8x128xf32>
      %60 = arith.addf %58, %59 : vector<8x128xf32>
      %61 = vector.extract_strided_slice %56 {offsets = [0, 0], sizes = [8, 96], strides = [1, 1]} : vector<8x128xf32> to vector<8x96xf32>
      %62 = arith.negf %61 : vector<8x96xf32>
      %63 = math.exp %62 : vector<8x96xf32>
      %cst_43 = arith.constant 1.000000e+00 : f32
      %64 = vector.broadcast %cst_43 : f32 to vector<8x96xf32>
      %65 = arith.addf %64, %63 : vector<8x96xf32>
      %66 = arith.divf %64, %65 : vector<8x96xf32>
      %67 = vector.extract_strided_slice %56 {offsets = [0, 96], sizes = [8, 32], strides = [1, 1]} : vector<8x128xf32> to vector<8x32xf32>
      %68 = math.tanh %67 : vector<8x32xf32>
      %69 = vector.extract_strided_slice %66 {offsets = [0, 32], sizes = [8, 32], strides = [1, 1]} : vector<8x96xf32> to vector<8x32xf32>
      %70 = arith.mulf %69, %arg17 : vector<8x32xf32>
      %71 = vector.extract_strided_slice %66 {offsets = [0, 0], sizes = [8, 32], strides = [1, 1]} : vector<8x96xf32> to vector<8x32xf32>
      %72 = arith.mulf %71, %68 : vector<8x32xf32>
      %73 = arith.addf %70, %72 : vector<8x32xf32>
      %74 = vector.extract_strided_slice %66 {offsets = [0, 64], sizes = [8, 32], strides = [1, 1]} : vector<8x96xf32> to vector<8x32xf32>
      %75 = math.tanh %73 : vector<8x32xf32>
      %76 = arith.mulf %74, %75 : vector<8x32xf32>
      %77 = vector.extract_strided_slice %60 {offsets = [0, 0], sizes = [8, 96], strides = [1, 1]} : vector<8x128xf32> to vector<8x96xf32>
      %78 = arith.negf %77 : vector<8x96xf32>
      %79 = math.exp %78 : vector<8x96xf32>
      %cst_44 = arith.constant 1.000000e+00 : f32
      %80 = vector.broadcast %cst_44 : f32 to vector<8x96xf32>
      %81 = arith.addf %80, %79 : vector<8x96xf32>
      %82 = arith.divf %80, %81 : vector<8x96xf32>
      %83 = vector.extract_strided_slice %60 {offsets = [0, 96], sizes = [8, 32], strides = [1, 1]} : vector<8x128xf32> to vector<8x32xf32>
      %84 = math.tanh %83 : vector<8x32xf32>
      %85 = vector.extract_strided_slice %82 {offsets = [0, 32], sizes = [8, 32], strides = [1, 1]} : vector<8x96xf32> to vector<8x32xf32>
      %86 = arith.mulf %85, %arg19 : vector<8x32xf32>
      %87 = vector.extract_strided_slice %82 {offsets = [0, 0], sizes = [8, 32], strides = [1, 1]} : vector<8x96xf32> to vector<8x32xf32>
      %88 = arith.mulf %87, %84 : vector<8x32xf32>
      %89 = arith.addf %86, %88 : vector<8x32xf32>
      %90 = vector.extract_strided_slice %82 {offsets = [0, 64], sizes = [8, 32], strides = [1, 1]} : vector<8x96xf32> to vector<8x32xf32>
      %91 = math.tanh %89 : vector<8x32xf32>
      %92 = arith.mulf %90, %91 : vector<8x32xf32>
      %93 = arith.index_cast %47 : i32 to index
      %c0_45 = arith.constant 0 : index
      %94 = vector.load %arg1[%93, %c0_45] : memref<64x1xf32, #tpu.memory_space<vmem>>, vector<8x1xf32>
      %95 = arith.index_cast %50 : i32 to index
      %c0_46 = arith.constant 0 : index
      %96 = vector.load %arg1[%95, %c0_46] : memref<64x1xf32, #tpu.memory_space<vmem>>, vector<8x1xf32>
      %cst_47 = arith.constant 0.000000e+00 : f32
      %97 = vector.broadcast %cst_47 : f32 to vector<8x1xf32>
      %98 = arith.cmpf ogt, %94, %97 : vector<8x1xf32>
      %cst_48 = arith.constant 0.000000e+00 : f32
      %99 = vector.broadcast %cst_48 : f32 to vector<8x1xf32>
      %100 = arith.cmpf ogt, %96, %99 : vector<8x1xf32>
      %101 = vector.shape_cast %98 : vector<8x1xi1> to vector<8x1xi1>
      %102 = vector.broadcast %101 : vector<8x1xi1> to vector<8x32xi1>
      %103 = arith.select %102, %76, %arg16 : vector<8x32xi1>, vector<8x32xf32>
      %104 = vector.shape_cast %98 : vector<8x1xi1> to vector<8x1xi1>
      %105 = vector.broadcast %104 : vector<8x1xi1> to vector<8x32xi1>
      %106 = arith.select %105, %73, %arg17 : vector<8x32xi1>, vector<8x32xf32>
      %107 = vector.shape_cast %100 : vector<8x1xi1> to vector<8x1xi1>
      %108 = vector.broadcast %107 : vector<8x1xi1> to vector<8x32xi1>
      %109 = arith.select %108, %92, %arg18 : vector<8x32xi1>, vector<8x32xf32>
      %110 = vector.shape_cast %100 : vector<8x1xi1> to vector<8x1xi1>
      %111 = vector.broadcast %110 : vector<8x1xi1> to vector<8x32xi1>
      %112 = arith.select %111, %89, %arg19 : vector<8x32xi1>, vector<8x32xf32>
      %113 = vector.broadcast %94 : vector<8x1xf32> to vector<8x32xf32>
      %114 = arith.mulf %113, %76 : vector<8x32xf32>
      %115 = arith.index_cast %47 : i32 to index
      %c0_49 = arith.constant 0 : index
      %116 = vector.load %arg13[%115, %c0_49] : memref<64x64xf32, #tpu.memory_space<vmem>>, vector<8x32xf32>
      tpu.vector_store %arg13[%115, %c0_49], %114 {strides = array<i32>} : memref<64x64xf32, #tpu.memory_space<vmem>>, vector<8x32xf32>,
      %117 = vector.broadcast %96 : vector<8x1xf32> to vector<8x32xf32>
      %118 = arith.mulf %117, %92 : vector<8x32xf32>
      %119 = arith.index_cast %50 : i32 to index
      %c32 = arith.constant 32 : index
      %120 = vector.load %arg13[%119, %c32] : memref<64x64xf32, #tpu.memory_space<vmem>>, vector<8x32xf32>
      tpu.vector_store %arg13[%119, %c32], %118 {strides = array<i32>} : memref<64x64xf32, #tpu.memory_space<vmem>>, vector<8x32xf32>,
      scf.yield %103, %106, %109, %112 : vector<8x32xf32>, vector<8x32xf32>, vector<8x32xf32>, vector<8x32xf32>
    }
    %c8_i32_10 = arith.constant 8 : i32
    %c0_11 = arith.constant 0 : index
    %c0_12 = arith.constant 0 : index
    %12 = vector.load %arg13[%c0_11, %c0_12] : memref<64x64xf32, #tpu.memory_space<vmem>>, vector<64x64xf32>
    %13 = arith.truncf %12 : vector<64x64xf32> to vector<64x64xbf16>
    %c0_13 = arith.constant 0 : index
    %c0_14 = arith.constant 0 : index
    %14 = vector.load %arg6[%c0_13, %c0_14] : memref<64x256xbf16, #tpu.memory_space<vmem>>, vector<64x256xbf16>
    %cst_15 = arith.constant dense<0.000000e+00> : vector<64x256xf32>
    %15 = tpu.matmul %13, %14, %cst_15 {dimension_numbers = #tpu.dot_dimension_numbers<[1], [0], [0], [1], [0, 0, 1, 1], [], []>} : vector<64x64xbf16>, vector<64x256xbf16>, vector<64x256xf32> -> vector<64x256xf32>
    %c0_16 = arith.constant 0 : index
    %c0_17 = arith.constant 0 : index
    %16 = vector.load %arg8[%c0_16, %c0_17] : memref<1x256xf32, #tpu.memory_space<vmem>>, vector<1x256xf32>
    %17 = vector.broadcast %16 : vector<1x256xf32> to vector<64x256xf32>
    %18 = arith.addf %15, %17 : vector<64x256xf32>
    %c0_18 = arith.constant 0 : index
    %c0_19 = arith.constant 0 : index
    %19 = vector.load %arg12[%c0_18, %c0_19] : memref<64x256xf32, #tpu.memory_space<vmem>>, vector<64x256xf32>
    tpu.vector_store %arg12[%c0_18, %c0_19], %18 {strides = array<i32>} : memref<64x256xf32, #tpu.memory_space<vmem>>, vector<64x256xf32>,
    %c0_20 = arith.constant 0 : index
    %c0_21 = arith.constant 0 : index
    %20 = vector.load %arg7[%c0_20, %c0_21] : memref<64x256xf32, #tpu.memory_space<vmem>>, vector<64x256xf32>
    %cst_22 = arith.constant 0.000000e+00 : f32
    %21 = vector.broadcast %cst_22 : f32 to vector<8x32xf32>
    %c0_i32_23 = arith.constant 0 : i32
    %c8_i32_24 = arith.constant 8 : i32
    %22 = arith.addi %c0_i32_23, %c8_i32_24 : i32
    %c1_i32_25 = arith.constant 1 : i32
    %23:4 = scf.for %arg15 = %c0_i32_23 to %22 step %c1_i32_25 iter_args(%arg16 = %21, %arg17 = %21, %arg18 = %21, %arg19 = %21) -> (vector<8x32xf32>, vector<8x32xf32>, vector<8x32xf32>, vector<8x32xf32>)  : i32 {
      %c8_i32_39 = arith.constant 8 : i32
      %46 = arith.muli %arg15, %c8_i32_39 : i32
      %47 = tpu.assume_multiple %46, 8 : i32
      %c7_i32 = arith.constant 7 : i32
      %48 = arith.subi %c7_i32, %arg15 : i32
      %c8_i32_40 = arith.constant 8 : i32
      %49 = arith.muli %48, %c8_i32_40 : i32
      %50 = tpu.assume_multiple %49, 8 : i32
      %51 = tpu.concatenate %arg16, %arg18 in 1 : vector<8x32xf32>, vector<8x32xf32> -> vector<8x64xf32>
      %cst_41 = arith.constant dense<0.000000e+00> : vector<8x256xf32>
      %52 = tpu.matmul %51, %20, %cst_41 {dimension_numbers = #tpu.dot_dimension_numbers<[1], [0], [0], [1], [0, 0, 1, 1], [], []>} : vector<8x64xf32>, vector<64x256xf32>, vector<8x256xf32> -> vector<8x256xf32>
      %53 = arith.index_cast %47 : i32 to index
      %c0_42 = arith.constant 0 : index
      %54 = vector.load %arg12[%53, %c0_42] : memref<64x256xf32, #tpu.memory_space<vmem>>, vector<8x128xf32>
      %55 = vector.extract_strided_slice %52 {offsets = [0, 0], sizes = [8, 128], strides = [1, 1]} : vector<8x256xf32> to vector<8x128xf32>
      %56 = arith.addf %54, %55 : vector<8x128xf32>
      %57 = arith.index_cast %50 : i32 to index
      %c128 = arith.constant 128 : index
      %58 = vector.load %arg12[%57, %c128] : memref<64x256xf32, #tpu.memory_space<vmem>>, vector<8x128xf32>
      %59 = vector.extract_strided_slice %52 {offsets = [0, 128], sizes = [8, 128], strides = [1, 1]} : vector<8x256xf32> to vector<8x128xf32>
      %60 = arith.addf %58, %59 : vector<8x128xf32>
      %61 = vector.extract_strided_slice %56 {offsets = [0, 0], sizes = [8, 96], strides = [1, 1]} : vector<8x128xf32> to vector<8x96xf32>
      %62 = arith.negf %61 : vector<8x96xf32>
      %63 = math.exp %62 : vector<8x96xf32>
      %cst_43 = arith.constant 1.000000e+00 : f32
      %64 = vector.broadcast %cst_43 : f32 to vector<8x96xf32>
      %65 = arith.addf %64, %63 : vector<8x96xf32>
      %66 = arith.divf %64, %65 : vector<8x96xf32>
      %67 = vector.extract_strided_slice %56 {offsets = [0, 96], sizes = [8, 32], strides = [1, 1]} : vector<8x128xf32> to vector<8x32xf32>
      %68 = math.tanh %67 : vector<8x32xf32>
      %69 = vector.extract_strided_slice %66 {offsets = [0, 32], sizes = [8, 32], strides = [1, 1]} : vector<8x96xf32> to vector<8x32xf32>
      %70 = arith.mulf %69, %arg17 : vector<8x32xf32>
      %71 = vector.extract_strided_slice %66 {offsets = [0, 0], sizes = [8, 32], strides = [1, 1]} : vector<8x96xf32> to vector<8x32xf32>
      %72 = arith.mulf %71, %68 : vector<8x32xf32>
      %73 = arith.addf %70, %72 : vector<8x32xf32>
      %74 = vector.extract_strided_slice %66 {offsets = [0, 64], sizes = [8, 32], strides = [1, 1]} : vector<8x96xf32> to vector<8x32xf32>
      %75 = math.tanh %73 : vector<8x32xf32>
      %76 = arith.mulf %74, %75 : vector<8x32xf32>
      %77 = vector.extract_strided_slice %60 {offsets = [0, 0], sizes = [8, 96], strides = [1, 1]} : vector<8x128xf32> to vector<8x96xf32>
      %78 = arith.negf %77 : vector<8x96xf32>
      %79 = math.exp %78 : vector<8x96xf32>
      %cst_44 = arith.constant 1.000000e+00 : f32
      %80 = vector.broadcast %cst_44 : f32 to vector<8x96xf32>
      %81 = arith.addf %80, %79 : vector<8x96xf32>
      %82 = arith.divf %80, %81 : vector<8x96xf32>
      %83 = vector.extract_strided_slice %60 {offsets = [0, 96], sizes = [8, 32], strides = [1, 1]} : vector<8x128xf32> to vector<8x32xf32>
      %84 = math.tanh %83 : vector<8x32xf32>
      %85 = vector.extract_strided_slice %82 {offsets = [0, 32], sizes = [8, 32], strides = [1, 1]} : vector<8x96xf32> to vector<8x32xf32>
      %86 = arith.mulf %85, %arg19 : vector<8x32xf32>
      %87 = vector.extract_strided_slice %82 {offsets = [0, 0], sizes = [8, 32], strides = [1, 1]} : vector<8x96xf32> to vector<8x32xf32>
      %88 = arith.mulf %87, %84 : vector<8x32xf32>
      %89 = arith.addf %86, %88 : vector<8x32xf32>
      %90 = vector.extract_strided_slice %82 {offsets = [0, 64], sizes = [8, 32], strides = [1, 1]} : vector<8x96xf32> to vector<8x32xf32>
      %91 = math.tanh %89 : vector<8x32xf32>
      %92 = arith.mulf %90, %91 : vector<8x32xf32>
      %93 = arith.index_cast %47 : i32 to index
      %c0_45 = arith.constant 0 : index
      %94 = vector.load %arg1[%93, %c0_45] : memref<64x1xf32, #tpu.memory_space<vmem>>, vector<8x1xf32>
      %95 = arith.index_cast %50 : i32 to index
      %c0_46 = arith.constant 0 : index
      %96 = vector.load %arg1[%95, %c0_46] : memref<64x1xf32, #tpu.memory_space<vmem>>, vector<8x1xf32>
      %cst_47 = arith.constant 0.000000e+00 : f32
      %97 = vector.broadcast %cst_47 : f32 to vector<8x1xf32>
      %98 = arith.cmpf ogt, %94, %97 : vector<8x1xf32>
      %cst_48 = arith.constant 0.000000e+00 : f32
      %99 = vector.broadcast %cst_48 : f32 to vector<8x1xf32>
      %100 = arith.cmpf ogt, %96, %99 : vector<8x1xf32>
      %101 = vector.shape_cast %98 : vector<8x1xi1> to vector<8x1xi1>
      %102 = vector.broadcast %101 : vector<8x1xi1> to vector<8x32xi1>
      %103 = arith.select %102, %76, %arg16 : vector<8x32xi1>, vector<8x32xf32>
      %104 = vector.shape_cast %98 : vector<8x1xi1> to vector<8x1xi1>
      %105 = vector.broadcast %104 : vector<8x1xi1> to vector<8x32xi1>
      %106 = arith.select %105, %73, %arg17 : vector<8x32xi1>, vector<8x32xf32>
      %107 = vector.shape_cast %100 : vector<8x1xi1> to vector<8x1xi1>
      %108 = vector.broadcast %107 : vector<8x1xi1> to vector<8x32xi1>
      %109 = arith.select %108, %92, %arg18 : vector<8x32xi1>, vector<8x32xf32>
      %110 = vector.shape_cast %100 : vector<8x1xi1> to vector<8x1xi1>
      %111 = vector.broadcast %110 : vector<8x1xi1> to vector<8x32xi1>
      %112 = arith.select %111, %89, %arg19 : vector<8x32xi1>, vector<8x32xf32>
      %113 = vector.broadcast %94 : vector<8x1xf32> to vector<8x32xf32>
      %114 = arith.mulf %113, %76 : vector<8x32xf32>
      %115 = arith.index_cast %47 : i32 to index
      %c0_49 = arith.constant 0 : index
      %116 = vector.load %arg14[%115, %c0_49] : memref<64x64xf32, #tpu.memory_space<vmem>>, vector<8x32xf32>
      tpu.vector_store %arg14[%115, %c0_49], %114 {strides = array<i32>} : memref<64x64xf32, #tpu.memory_space<vmem>>, vector<8x32xf32>,
      %117 = vector.broadcast %96 : vector<8x1xf32> to vector<8x32xf32>
      %118 = arith.mulf %117, %92 : vector<8x32xf32>
      %119 = arith.index_cast %50 : i32 to index
      %c32 = arith.constant 32 : index
      %120 = vector.load %arg14[%119, %c32] : memref<64x64xf32, #tpu.memory_space<vmem>>, vector<8x32xf32>
      tpu.vector_store %arg14[%119, %c32], %118 {strides = array<i32>} : memref<64x64xf32, #tpu.memory_space<vmem>>, vector<8x32xf32>,
      scf.yield %103, %106, %109, %112 : vector<8x32xf32>, vector<8x32xf32>, vector<8x32xf32>, vector<8x32xf32>
    }
    %c8_i32_26 = arith.constant 8 : i32
    %c0_27 = arith.constant 0 : index
    %c0_28 = arith.constant 0 : index
    %24 = vector.load %arg14[%c0_27, %c0_28] : memref<64x64xf32, #tpu.memory_space<vmem>>, vector<64x64xf32>
    %c0_29 = arith.constant 0 : index
    %c0_30 = arith.constant 0 : index
    %25 = vector.load %arg9[%c0_29, %c0_30] : memref<64x128xf32, #tpu.memory_space<vmem>>, vector<64x128xf32>
    %cst_31 = arith.constant dense<0.000000e+00> : vector<64x128xf32>
    %26 = tpu.matmul %24, %25, %cst_31 {dimension_numbers = #tpu.dot_dimension_numbers<[1], [0], [0], [1], [0, 0, 1, 1], [], []>} : vector<64x64xf32>, vector<64x128xf32>, vector<64x128xf32> -> vector<64x128xf32>
    %c0_32 = arith.constant 0 : index
    %c0_33 = arith.constant 0 : index
    %27 = vector.load %arg10[%c0_32, %c0_33] : memref<1x128xf32, #tpu.memory_space<vmem>>, vector<1x128xf32>
    %28 = vector.broadcast %27 : vector<1x128xf32> to vector<64x128xf32>
    %29 = arith.addf %26, %28 : vector<64x128xf32>
    %30 = tpu.iota {dimensions = array<i32: 1>} : vector<64x128xi32>
    %c33_i32 = arith.constant 33 : i32
    %31 = vector.broadcast %c33_i32 : i32 to vector<64x128xi32>
    %32 = arith.cmpi slt, %30, %31 : vector<64x128xi32>
    %cst_34 = arith.constant -1.000000e+30 : f32
    %33 = vector.broadcast %cst_34 : f32 to vector<64x128xf32>
    %34 = arith.select %32, %29, %33 : vector<64x128xi1>, vector<64x128xf32>
    %cst_35 = arith.constant dense<0xFF800000> : vector<64xf32>
    %35 = vector.multi_reduction <maximumf>, %34, %cst_35 [1] : vector<64x128xf32> to vector<64xf32>
    %36 = vector.shape_cast %35 : vector<64xf32> to vector<64x1xf32>
    %37 = vector.broadcast %36 : vector<64x1xf32> to vector<64x128xf32>
    %38 = arith.subf %34, %37 : vector<64x128xf32>
    %39 = math.exp %38 : vector<64x128xf32>
    %cst_36 = arith.constant dense<0.000000e+00> : vector<64xf32>
    %40 = vector.multi_reduction <add>, %39, %cst_36 [1] : vector<64x128xf32> to vector<64xf32>
    %41 = vector.shape_cast %40 : vector<64xf32> to vector<64x1xf32>
    %42 = math.log %41 : vector<64x1xf32>
    %43 = vector.broadcast %42 : vector<64x1xf32> to vector<64x128xf32>
    %44 = arith.subf %38, %43 : vector<64x128xf32>
    %c0_37 = arith.constant 0 : index
    %c0_38 = arith.constant 0 : index
    %45 = vector.load %arg11[%c0_37, %c0_38] : memref<64x128xf32, #tpu.memory_space<vmem>>, vector<64x128xf32>
    tpu.vector_store %arg11[%c0_37, %c0_38], %44 {strides = array<i32>} : memref<64x128xf32, #tpu.memory_space<vmem>>, vector<64x128xf32>,
    return
  }
  func.func @transform_0(%arg0: i32) -> (i32, i32) {
    %c0_i32 = arith.constant 0 : i32
    %c0_i32_0 = arith.constant 0 : i32
    %c0_i32_1 = arith.constant 0 : i32
    return %c0_i32, %c0_i32_0 : i32, i32
  }
  func.func @transform_1(%arg0: i32) -> (i32, i32) {
    %c0_i32 = arith.constant 0 : i32
    %c0_i32_0 = arith.constant 0 : i32
    %c0_i32_1 = arith.constant 0 : i32
    return %c0_i32, %c0_i32_0 : i32, i32
  }
  func.func @transform_2(%arg0: i32) -> (i32, i32) {
    %c0_i32 = arith.constant 0 : i32
    %c0_i32_0 = arith.constant 0 : i32
    %c0_i32_1 = arith.constant 0 : i32
    return %c0_i32, %c0_i32_0 : i32, i32
  }
  func.func @transform_3(%arg0: i32) -> (i32, i32) {
    %c0_i32 = arith.constant 0 : i32
    %c0_i32_0 = arith.constant 0 : i32
    %c0_i32_1 = arith.constant 0 : i32
    return %c0_i32, %c0_i32_0 : i32, i32
  }
  func.func @transform_4(%arg0: i32) -> (i32, i32) {
    %c0_i32 = arith.constant 0 : i32
    %c0_i32_0 = arith.constant 0 : i32
    %c0_i32_1 = arith.constant 0 : i32
    return %c0_i32, %c0_i32_0 : i32, i32
  }
  func.func @transform_5(%arg0: i32) -> (i32, i32) {
    %c0_i32 = arith.constant 0 : i32
    %c0_i32_0 = arith.constant 0 : i32
    %c0_i32_1 = arith.constant 0 : i32
    return %c0_i32, %c0_i32_0 : i32, i32
  }
  func.func @transform_6(%arg0: i32) -> (i32, i32) {
    %c0_i32 = arith.constant 0 : i32
    %c0_i32_0 = arith.constant 0 : i32
    %c0_i32_1 = arith.constant 0 : i32
    return %c0_i32, %c0_i32_0 : i32, i32
  }
  func.func @transform_7(%arg0: i32) -> (i32, i32) {
    %c0_i32 = arith.constant 0 : i32
    %c0_i32_0 = arith.constant 0 : i32
    %c0_i32_1 = arith.constant 0 : i32
    return %c0_i32, %c0_i32_0 : i32, i32
  }
  func.func @transform_8(%arg0: i32) -> (i32, i32) {
    %c0_i32 = arith.constant 0 : i32
    %c0_i32_0 = arith.constant 0 : i32
    %c0_i32_1 = arith.constant 0 : i32
    return %c0_i32, %c0_i32_0 : i32, i32
  }
  func.func @transform_9(%arg0: i32) -> (i32, i32) {
    %c0_i32 = arith.constant 0 : i32
    %c0_i32_0 = arith.constant 0 : i32
    %c0_i32_1 = arith.constant 0 : i32
    return %c0_i32, %c0_i32_0 : i32, i32
  }
  func.func @transform_10(%arg0: i32) -> (i32, i32) {
    %c0_i32 = arith.constant 0 : i32
    %c0_i32_0 = arith.constant 0 : i32
    %c0_i32_1 = arith.constant 0 : i32
    return %c0_i32, %c0_i32_0 : i32, i32
  }
}

</mosaic_0001>

<bundles_post_ra>
// kernel: simple_asr_forward.1
= control target key start
LH: loop header
LB: loop body
LE: loop exit
PB: predicated region body
PF: predicated region fallthrough
CT: control target
= control target key end

     0   :  { %15 = vsyncpa [#allocation6], 0  ;;  %s2246_s0 = inlined_call_operand.vmem [shape: f32[64,1], index: 0, kind: input, shape index: {}]   ;;  %s2247_s1 = inlined_call_operand.vmem [shape: f32[64,20], index: 1, kind: input, shape index: {}]   ;;  %s2248_s2 = inlined_call_operand.vmem [shape: bf16[20,256], index: 2, kind: input, shape index: {}]   ;;  %s2249_s3 = inlined_call_operand.vmem [shape: f32[64,256], index: 3, kind: input, shape index: {}]   ;;  %s2250_s4 = inlined_call_operand.vmem [shape: f32[1,256], index: 4, kind: input, shape index: {}]   ;;  %s2251_s5 = inlined_call_operand.hbm [shape: bf16[64,256], index: 5, kind: input, shape index: {}]   ;;  %s2252_s6 = inlined_call_operand.vmem [shape: f32[64,256], index: 6, kind: input, shape index: {}]   ;;  %s2253_s7 = inlined_call_operand.vmem [shape: f32[1,256], index: 7, kind: input, shape index: {}]   ;;  %s2254_s8 = inlined_call_operand.hbm [shape: f32[64,128], index: 8, kind: input, shape index: {}]   ;;  %s2255_s9 = inlined_call_operand.hbm [shape: f32[1,128], index: 9, kind: input, shape index: {}]   ;;  %s2256_s10 = inlined_call_operand.vmem [shape: f32[64,128], index: 10, kind: output, shape index: {}]  }
   0x1   :  { %16 = vsyncpa [#allocation8], 0  ;;  %s1651_s13 = smov [#allocation7]   ;;  %s1652_s15 = smov [#allocation5]  }
   0x2   :  { %s48_s14 = sshll.u32 %s1651_s13, 4  ;;  %s32_s16 = sshll.u32 %s1652_s15, 4  ;;  %s49_s14 = int_to_ptr.vmem [resolvable:$true] %s48_s14  ;;  %s1722_s16 = int_to_ptr.vmem [resolvable:$true] %s32_s16 }
   0x3   :  { %s1501_s19 = scalar_lea.hbm %s2254_s8, 1024 }
   0x4   :  { %p1502_p0 = scmp.ne.s32.totalorder %s2254_s8, %s1501_s19  ;;  %p1505_p1 = scmp.lt.u32.totalorder %s1501_s19, %s2254_s8 }
   0x6   :  { %p1507_p2 = pnand %p1505_p1, %p1502_p0 }
   0x8   :  { %1510 = shalt.err (!%p1507_p2)
}
   0x9   :  { %s1511_s24 = scalar_lea.vmem %s49_s14, 1024  ;;  %p1516_p4 = scmp.lt.s32.totalorder %s49_s14, %s49_s14 }
   0xa   :  { %p1512_p3 = scmp.ne.s32.totalorder %s49_s14, %s1511_s24  ;;  %p1517_p5 = scmp.lt.s32.totalorder %s1511_s24, %s1511_s24 }
   0xc   :  { %p1518_p6 = por %p1517_p5, %p1516_p4 }
   0xe   :  { %p1519_p7 = pnand %p1518_p6, %p1512_p3 }
  0x10   :  { %1522 = shalt.err (!%p1519_p7)
}
  0x11   :  { %s1653_s25 = smov 128   ;;  %s1654_s26 = smov 8  }
  0x12   :  { %54 = dma.hbm_to_vmem [thread:$0]  %s2254_s8, 1024, %s49_s14, [#allocation8], %s1653_s25, %s1653_s25, %s1654_s26  }
  0x13   :  { %s1523_s11 = scalar_lea.hbm %s2251_s5, 1024 }
  0x14   :  { %p1524_p8 = scmp.ne.s32.totalorder %s2251_s5, %s1523_s11  ;;  %p1527_p9 = scmp.lt.u32.totalorder %s1523_s11, %s2251_s5 }
  0x16   :  { %p1529_p10 = pnand %p1527_p9, %p1524_p8 }
  0x18   :  { %1532 = shalt.err (!%p1529_p10)
}
  0x19   :  { %s1533_s18 = scalar_lea.vmem %s1722_s16, 1024  ;;  %p1538_p12 = scmp.lt.s32.totalorder %s1722_s16, %s1722_s16 }
  0x1a   :  { %p1534_p11 = scmp.ne.s32.totalorder %s1722_s16, %s1533_s18  ;;  %p1539_p13 = scmp.lt.s32.totalorder %s1533_s18, %s1533_s18 }
  0x1c   :  { %p1540_p0 = por %p1539_p13, %p1538_p12 }
  0x1e   :  { %p1541_p1 = pnand %p1540_p0, %p1534_p11 }
  0x20   :  { %1544 = shalt.err (!%p1541_p1)
}
  0x21   :  { %38 = dma.hbm_to_vmem [thread:$0]  %s2251_s5, 1024, %s1722_s16, [#allocation6], %s1653_s25, %s1653_s25, %s1654_s26  }
  0x22   :  { %s1655_s19 = smov [#allocation9]   ;;  %s1545_s23 = scalar_lea.hbm %s2255_s9, 16 }
  0x23   :  { %s61_s20 = sshll.u32 %s1655_s19, 4  ;;  %p1546_p2 = scmp.ne.s32.totalorder %s2255_s9, %s1545_s23  ;;  %s62_s20 = int_to_ptr.vmem [resolvable:$true] %s61_s20 }
  0x24   :  { %p1549_p3 = scmp.lt.u32.totalorder %s1545_s23, %s2255_s9 }
  0x26   :  { %p1551_p4 = pnand %p1549_p3, %p1546_p2 }
  0x28   :  { %1554 = shalt.err (!%p1551_p4)
}
  0x29   :  { %s1555_s30 = scalar_lea.vmem %s62_s20, 16  ;;  %s1559_s5 = scalar_lea.vmem %s62_s20, 32 }
  0x2a   :  { %p1556_p5 = scmp.ne.s32.totalorder %s62_s20, %s1555_s30  ;;  %p1560_p6 = scmp.lt.s32.totalorder %s62_s20, %s62_s20 }
  0x2b   :  { %p1561_p7 = scmp.lt.s32.totalorder %s1559_s5, %s1555_s30 }
  0x2d   :  { %p1562_p8 = por %p1561_p7, %p1560_p6 }
  0x2f   :  { %p1563_p9 = pnand %p1562_p8, %p1556_p5 }
  0x31   :  { %1566 = shalt.err (!%p1563_p9)
}
  0x32   :  { %64 = dma.hbm_to_vmem [thread:$0]  %s2255_s9, 16, %s62_s20, [#allocation8]  }
  0x33   :  { %1607 = dma.done.wait [#allocation6], 1024  }
  0x34   :  { %1608 = vsyncadd [#allocation6], 4294966272 }
  0x35   :  { %1609 = dma.done.wait [#allocation8], 1040  }
  0x36   :  { %1610 = vsyncadd [#allocation8], 4294966256  ;;  %v1656_v0 = vmov 0   ;;  %v1770_v1 = vld [vmem:[%s2249_s3] sm:$0xff]  ;;  %v1775_v2 = vld [vmem:[%s2249_s3 + $0x8] sm:$0xff]  ;;  %vm130_vm0 = vcmask 1041408   ;;  %v92_v35 = vlaneseq }
  0x37   :  { %169 = vmatprep.mubr.bf16.mxu0 %v1656_v0  ;;  %189 = vmatprep.mubr.bf16.mxu1 %v1656_v0  ;;  %v1780_v3 = vld [vmem:[%s2249_s3 + $0x10] sm:$0xff]  ;;  %v1785_v4 = vld [vmem:[%s2249_s3 + $0x18] sm:$0xff]  ;;  %v1790_v5 = vld [vmem:[%s2249_s3 + $0x20] sm:$0xff]  ;;  %vm117_vm1 = vcmask 162816  }
  0x38   :  { %v1795_v6 = vld [vmem:[%s2249_s3 + $0x28] sm:$0xff]  ;;  %v1800_v7 = vld [vmem:[%s2249_s3 + $0x30] sm:$0xff]  ;;  %v1805_v8 = vld [vmem:[%s2249_s3 + $0x38] sm:$0xff]  ;;  %v1883_v36 = vshrl.u32 %v92_v35, 7 }
  0x39   :  { %v1810_v9 = vld [vmem:[%s2249_s3 + $0x40] sm:$0xff]  ;;  %v1815_v10 = vld [vmem:[%s2249_s3 + $0x48] sm:$0xff]  ;;  %v1820_v11 = vld [vmem:[%s2249_s3 + $0x50] sm:$0xff] }
  0x3a   :  { %v1825_v12 = vld [vmem:[%s2249_s3 + $0x58] sm:$0xff]  ;;  %v1830_v13 = vld [vmem:[%s2249_s3 + $0x60] sm:$0xff]  ;;  %v1835_v14 = vld [vmem:[%s2249_s3 + $0x68] sm:$0xff]  ;;  %v94_v37 = vsub.s32 0, %v1883_v36  ;;  %v98_v39 = vsub.s32 1, %v1883_v36 }
  0x3b   :  { %v1840_v15 = vld [vmem:[%s2249_s3 + $0x70] sm:$0xff]  ;;  %v1845_v16 = vld [vmem:[%s2249_s3 + $0x78] sm:$0xff]  ;;  %v1416_v17 = vld [vmem:[%s2248_s2 + $0x4] ss:$8 sps:$4 sm:$0xff]  }
  0x3c   :  { %v1418_v18 = vld [vmem:[%s2248_s2] ss:$8 sps:$4 sm:$0xff]   ;;  %v89_v19 = vld [vmem:[%s2248_s2 + $0x10] sm:$0x33]  ;;  %137 = vmatprep.subr.bf16.mxu0 %v1416_v17  ;;  %1300 = vmatprep.subr.bf16.mxu1 %v1416_v17  ;;  %v78_v30 = vld [vmem:[%s2247_s1 + $0x18] sm:$0xff] }
  0x3d   :  { %v1159_v20 = vcombine.high %v89_v19, %v89_v19  ;;  %v1158_v21 = vcombine.low %v89_v19, %v89_v19  ;;  %v75_v22 = vld [vmem:[%s2247_s1] sm:$0xff]  ;;  %138 = vmatpush1.bf16.msra.mxu0 %v1418_v18  ;;  %1302 = vmatpush1.bf16.msra.mxu1 %v1418_v18  ;;  %v76_v23 = vld [vmem:[%s2247_s1 + $0x8] sm:$0xff]  ;;  %v77_v29 = vld [vmem:[%s2247_s1 + $0x10] sm:$0xff] }
  0x3e   :  { %v79_v24 = vld [vmem:[%s2247_s1 + $0x20] sm:$0xff]  ;;  %v80_v25 = vld [vmem:[%s2247_s1 + $0x28] sm:$0xff]  ;;  %v83_v27 = vpack.c.bf16 %v76_v23, %v75_v22  ;;  %v81_v31 = vld [vmem:[%s2247_s1 + $0x30] sm:$0xff]  ;;  %v84_v33 = vpack.c.bf16 %v78_v30, %v77_v29  ;;  %v1898_v29 = vmov 0.0   ;;  %v1900_v30 = vmov 0.0  }
  0x3f   :  { %1160 = vmatprep.subr.msk.bf16.mxu0 %vm130_vm0, %v1159_v20  ;;  %1301 = vmatprep.subr.msk.bf16.mxu1 %vm130_vm0, %v1159_v20  ;;  %v132_v26 = vsel %vm130_vm0, %v1158_v21, 0  ;;  %v85_v28 = vpack.c.bf16 %v80_v25, %v79_v24  ;;  %v82_v32 = vld [vmem:[%s2247_s1 + $0x38] sm:$0xff]  ;;  %v90_v38 = vld [vmem:[%s2250_s4] sm:$0x3]  ;;  %s1902_s1 = smov 0  }
  0x40   :  { %v86_v34 = vpack.c.bf16 %v82_v32, %v81_v31  ;;  %v95_v40 = vrot.slane %v90_v38, %v94_v37  ;;  %v99_v41 = vrot.slane %v90_v38, %v98_v39 }
  0x41   :  { %140 = vmatpush1.bf16.msra.mxu0 %v132_v26  ;;  %1303 = vmatpush1.bf16.msra.mxu1 %v132_v26 }
  0x44   :  { %1161 = vmatmul.mubr.msk.bf16.vlgmr.msra.gmra.mrb[0].mxu0 %vm117_vm1, %v83_v27  ;;  %1163 = vmatmul.mubr.msk.bf16.vlgmr.msra.gmra.mrb[0].mxu1 %vm117_vm1, %v85_v28  ;;  %v1894_v27 = vmov 0.0   ;;  %v1896_v28 = vmov 0.0  }
  0x45   :  { %179 = vmatprep.mubr.bf16.mxu0 %v1656_v0  ;;  %199 = vmatprep.mubr.bf16.mxu1 %v1656_v0 }
  0x4c   :  { %1162 = vmatmul.mubr.msk.bf16.gmra.mrb[4].mxu0 %vm117_vm1, %v84_v33  ;;  %1164 = vmatmul.mubr.msk.bf16.gmra.mrb[4].mxu1 %vm117_vm1, %v86_v34 }
 0x117   :  { %v171_v42 = vpop.f32.mrb[0].mxu0  ;;  %v191_v43 = vpop.f32.mrb[0].mxu1 }
 0x118   :  { %v172_v44 = vadd.f32 %v171_v42, %v95_v40  ;;  %v192_v45 = vadd.f32 %v191_v43, %v95_v40  ;;  %v173_v46 = vpop.f32.mrb[1].mxu0  ;;  %v193_v47 = vpop.f32.mrb[1].mxu1 }
 0x119   :  { %v174_v48 = vadd.f32 %v173_v46, %v99_v41  ;;  %v194_v49 = vadd.f32 %v193_v47, %v99_v41  ;;  %v175_v50 = vpop.f32.mrb[2].mxu0  ;;  %v195_v51 = vpop.f32.mrb[2].mxu1 }
 0x11a   :  { %210 = vst [vmem:[#allocation2] sm:$0xff] %v172_v44  ;;  %218 = vst [vmem:[#allocation2 + $0x40] sm:$0xff] %v192_v45  ;;  %v176_v52 = vadd.f32 %v175_v50, %v95_v40  ;;  %v196_v53 = vadd.f32 %v195_v51, %v95_v40  ;;  %v177_v54 = vpop.f32.mrb[3].mxu0  ;;  %v197_v55 = vpop.f32.mrb[3].mxu1 }
 0x11b   :  { %211 = vst [vmem:[#allocation2 + $0x8] sm:$0xff] %v174_v48  ;;  %219 = vst [vmem:[#allocation2 + $0x48] sm:$0xff] %v194_v49  ;;  %v178_v56 = vadd.f32 %v177_v54, %v99_v41  ;;  %v198_v57 = vadd.f32 %v197_v55, %v99_v41 }
 0x11c   :  { %212 = vst [vmem:[#allocation2 + $0x10] sm:$0xff] %v176_v52  ;;  %220 = vst [vmem:[#allocation2 + $0x50] sm:$0xff] %v196_v53 }
 0x11d   :  { %213 = vst [vmem:[#allocation2 + $0x18] sm:$0xff] %v178_v56  ;;  %221 = vst [vmem:[#allocation2 + $0x58] sm:$0xff] %v198_v57 }
 0x11f   :  { %v181_v58 = vpop.f32.mrb[4].mxu0  ;;  %v201_v59 = vpop.f32.mrb[4].mxu1 }
 0x120   :  { %v182_v60 = vadd.f32 %v181_v58, %v95_v40  ;;  %v202_v61 = vadd.f32 %v201_v59, %v95_v40  ;;  %v183_v62 = vpop.f32.mrb[5].mxu0  ;;  %v203_v63 = vpop.f32.mrb[5].mxu1 }
 0x121   :  { %v184_v17 = vadd.f32 %v183_v62, %v99_v41  ;;  %v204_v18 = vadd.f32 %v203_v63, %v99_v41  ;;  %v185_v19 = vpop.f32.mrb[6].mxu0  ;;  %v205_v20 = vpop.f32.mrb[6].mxu1 }
 0x122   :  { %214 = vst [vmem:[#allocation2 + $0x20] sm:$0xff] %v182_v60  ;;  %222 = vst [vmem:[#allocation2 + $0x60] sm:$0xff] %v202_v61  ;;  %v186_v21 = vadd.f32 %v185_v19, %v95_v40  ;;  %v206_v22 = vadd.f32 %v205_v20, %v95_v40  ;;  %v187_v23 = vpop.f32.mrb[7].mxu0  ;;  %v207_v24 = vpop.f32.mrb[7].mxu1 }
 0x123   :  { %215 = vst [vmem:[#allocation2 + $0x28] sm:$0xff] %v184_v17  ;;  %223 = vst [vmem:[#allocation2 + $0x68] sm:$0xff] %v204_v18  ;;  %v188_v25 = vadd.f32 %v187_v23, %v99_v41  ;;  %v208_v26 = vadd.f32 %v207_v24, %v99_v41 }
 0x124   :  { %216 = vst [vmem:[#allocation2 + $0x30] sm:$0xff] %v186_v21  ;;  %224 = vst [vmem:[#allocation2 + $0x70] sm:$0xff] %v206_v22 }
 0x125   :  { %217 = vst [vmem:[#allocation2 + $0x38] sm:$0xff] %v188_v25  ;;  %225 = vst [vmem:[#allocation2 + $0x78] sm:$0xff] %v208_v26 }
 0x126 LB: > { %v1252_v31 = vpack.c.bf16 %v1785_v4, %v1775_v2  ;;  %v1254_v32 = vpack.c.bf16 %v1780_v3, %v1770_v1  ;;  %v1256_v33 = vpack.c.bf16 %v1805_v8, %v1795_v6  ;;  %s1657_s4 = smov 64   ;;  %v1258_v34 = vpack.c.bf16 %v1800_v7, %v1790_v5  ;;  %s1659_s8 = smov 96   ;;  %s1629_s1 = sphi %s1902_s1, %s247_s1   ;;  %v1625_v30 = vphi %v1900_v30, %v413_v30   ;;  %v1621_v29 = vphi %v1898_v29, %v414_v29   ;;  %v1617_v28 = vphi %v1896_v28, %v420_v28   ;;  %v1613_v27 = vphi %v1894_v27, %v421_v27  }
 0x127   : > { %256 = vrot.lane.b32.xlu0 %v1625_v30, %s1657_s4  ;;  %v1260_v38 = vpack.c.bf16 %v1825_v12, %v1815_v10  ;;  %v1658_v40 = vmov 0.0   ;;  %v1262_v41 = vpack.c.bf16 %v1820_v11, %v1810_v9  ;;  %v1264_v42 = vpack.c.bf16 %v1845_v16, %v1835_v14  ;;  %s253_s14 = ssub.s32 7, %s1629_s1  ;;  %s1943_s19 = sshll.u32 %s1629_s1, 3 }
 0x128   : > { %1253 = vmatprep.subr.bf16.mxu0 %v1252_v31  ;;  %333 = vmatprep.mubr.f32.mxu0 %v1658_v40  ;;  %v1266_v43 = vpack.c.bf16 %v1840_v15, %v1830_v13  ;;  %vm263_vm2 = vcmask 261120   ;;  %vm265_vm3 = vcmask 523264   ;;  %s1945_s20 = sshll.u32 %s253_s14, 3  ;;  %s340_s21 = sshra.s32 %s1943_s19, 3  ;;  %v1660_v53 = vmov 0  }
 0x129   : > { %1255 = vmatpush1.bf16.msra.mxu0 %v1254_v32  ;;  %s347_s22 = sshra.s32 %s1945_s20, 3  ;;  %s1204_s23 = sshll.u32 %s340_s21, 4  ;;  %1422 = vset.pattern.permute.xlu1 %v1660_v53  ;;  %vm445_vm8 = vcmask 523520  }
 0x12a   : > { %1257 = vmatprep.subr.bf16.mxu0 %v1256_v33  ;;  %s1205_s24 = sshll.u32 %s347_s22, 4  ;;  %s344_s3 = scalar_lea.vmem [#allocation2], %s1204_s23  ;;  %1421 = vset.pattern.permute.xlu0 %v1660_v53 }
 0x12b   : > { %260 = vrot.lane.b32.xlu0 %v1617_v28, %s1659_s8  ;;  %s351_s27 = scalar_lea.vmem [#allocation2], %s1205_s24  ;;  %s1661_s28 = smov 32  }
 0x12c   : > { %v345_v47 = vld [vmem:[%s344_s3] sm:$0xff]  ;;  %v352_v49 = vld [vmem:[%s351_s27 + $0x8] sm:$0xff]  ;;  %s402_s2 = scalar_lea.vmem %s2246_s0, %s1943_s19  ;;  %s404_s25 = scalar_lea.vmem %s2246_s0, %s1945_s20 }
 0x12d   : > { %1259 = vmatpush1.bf16.msra.mxu0 %v1258_v34  ;;  %v403_v20 = vld [vmem:[%s402_s2] sm:$0xff]  ;;  %s432_s26 = scalar_lea.vmem [#allocation3], %s1943_s19  ;;  %s444_s11 = scalar_lea.vmem [#allocation3], %s1945_s20 }
 0x12e   : > { %1261 = vmatprep.subr.bf16.mxu0 %v1260_v38  ;;  %v405_v22 = vld [vmem:[%s404_s25] sm:$0xff]  ;;  %vm406_vm4 = vcmp.gt.f32.partialorder %v403_v20, 0.0  ;;  %s247_s1 = sadd.s32 1, %s1629_s1  }
 0x12f   : > { %v408_v34 = vsel %vm406_vm4, 1, %v1660_v53  ;;  %vm407_vm5 = vcmp.gt.f32.partialorder %v405_v22, 0.0  ;;  %p244_p10 = scmp.ge.s32.totalorder %s247_s1, 8  }
 0x130   : > { %v415_v40 = vsel %vm407_vm5, 1, %v1660_v53  ;;  %v1439_v53 = vld [vmem:[#allocation5 + $0x4] ss:$8 sps:$4 sm:$0xff] (%p244_p10)   ;;  %584 = vmatprep.mubr.bf16.mxu1 (%p244_p10), %v1656_v0  ;;  %v1448_v1 = vld [vmem:[#allocation5 + $0x34] ss:$8 sps:$4 sm:$0xff] (%p244_p10)  }
 0x131   : > { %1263 = vmatpush1.bf16.msra.mxu0 %v1262_v41  ;;  %1304 = vmatprep.subr.bf16.mxu1 (%p244_p10), %v1439_v53  ;;  %v1450_v2 = vld [vmem:[#allocation5 + $0x30] ss:$8 sps:$4 sm:$0xff] (%p244_p10)   ;;  %v1997_v15 = vld [vmem:[%s2252_s6] sm:$0xff] (%p244_p10)  ;;  %v2002_v16 = vld [vmem:[%s2252_s6 + $0x8] sm:$0xff] (%p244_p10) }
 0x132   : > { %1265 = vmatprep.subr.bf16.mxu0 %v1264_v42 }
 0x135   : > { %1267 = vmatpush1.bf16.msra.mxu0 %v1266_v43 }
 0x136   :  { %532 = vmatprep.subr.bf16.mxu0 (%p244_p10), %v1439_v53 }
 0x199   : > { %v257_v44 = vpop.permute.xlu0 %256 }
 0x19d   : > { %v261_v45 = vpop.permute.xlu0 %260 }
 0x19e   : > { %v264_v46 = vsel %vm263_vm2, %v257_v44, %v261_v45 }
 0x19f   : > { %1167 = vmatmul.mubr.msk.f32.vlgmr.msra.gmra.mrb[0].mxu0 %vm265_vm3, %v264_v46 }
 0x1a0   :  { %564 = vmatprep.mubr.bf16.mxu0 (%p244_p10), %v1656_v0 }
 0x272   : > { %v335_v48 = vpop.f32.mrb[0].mxu0 }
 0x273   : > { %v346_v50 = vadd.f32 %v345_v47, %v335_v48  ;;  %v337_v51 = vpop.f32.mrb[1].mxu0 }
 0x274   : > { %v353_v52 = vadd.f32 %v352_v49, %v337_v51 }
 0x275   : > { %1423 = vtanh.f32 %v346_v50  ;;  %v1172_v56 = vmul.f32 -1.442695, %v346_v50 }
 0x276   : > { %1425 = vtanh.f32 %v353_v52  ;;  %v1173_v57 = vmul.f32 -1.442695, %v353_v52 }
 0x277   : > { %1427 = vpow2.f32 %v1172_v56  ;;  %v1444_v56 = vld [vmem:[#allocation5 + $0x10] ss:$8 sps:$4 sm:$0xff] (%p244_p10)  }
 0x278   : > { %1429 = vpow2.f32 %v1173_v57  ;;  %v1445_v57 = vld [vmem:[#allocation5 + $0x24] ss:$8 sps:$4 sm:$0xff] (%p244_p10)  }
 0x27f   : > { %v1424_v54 = vpop.eup %1423 }
 0x280   : > { %363 = vrot.lane.b32.xlu1 %v1424_v54, %s1661_s28  ;;  %v1426_v55 = vpop.eup %1425  ;;  %v1441_v54 = vld [vmem:[#allocation5] ss:$8 sps:$4 sm:$0xff] (%p244_p10)  }
 0x281   : > { %v1428_v58 = vpop.eup %1427  ;;  %533 = vmatpush1.bf16.msra.mxu0 (%p244_p10), %v1441_v54  ;;  %1308 = vmatpush1.bf16.msra.mxu1 (%p244_p10), %v1441_v54 }
 0x282   : > { %v357_v59 = vadd.f32 1.0, %v1428_v58  ;;  %v1430_v60 = vpop.eup %1429  ;;  %v2027_v58 = vld [vmem:[%s2252_s6 + $0x30] sm:$0xff] (%p244_p10) }
 0x283   : > { %v381_v61 = vadd.f32 1.0, %v1430_v60  ;;  %v2037_v60 = vld [vmem:[%s2252_s6 + $0x40] sm:$0xff] (%p244_p10) }
 0x284   : > { %387 = vrot.lane.b32.xlu1 %v1426_v55, %s1661_s28  ;;  %1431 = vrcp.f32 %v357_v59  ;;  %v1442_v55 = vld [vmem:[#allocation5 + $0x14] ss:$8 sps:$4 sm:$0xff] (%p244_p10)  }
 0x285   : > { %1433 = vrcp.f32 %v381_v61  ;;  %534 = vmatprep.subr.bf16.mxu0 (%p244_p10), %v1442_v55  ;;  %1305 = vmatprep.subr.bf16.mxu1 (%p244_p10), %v1442_v55  ;;  %v2032_v59 = vld [vmem:[%s2252_s6 + $0x38] sm:$0xff] (%p244_p10)  ;;  %v2042_v61 = vld [vmem:[%s2252_s6 + $0x48] sm:$0xff] (%p244_p10) }
 0x286   :  { %535 = vmatpush1.bf16.msra.mxu0 (%p244_p10), %v1444_v56  ;;  %1309 = vmatpush1.bf16.msra.mxu1 (%p244_p10), %v1444_v56 }
 0x287   :  { %536 = vmatprep.subr.bf16.mxu0 (%p244_p10), %v1445_v57  ;;  %1306 = vmatprep.subr.bf16.mxu1 (%p244_p10), %v1445_v57 }
 0x28e   : > { %v1432_v62 = vpop.eup %1431 }
 0x28f   : > { %v1434_v18 = vpop.eup %1433  ;;  %v361_v23 = vmul.f32 %v1621_v29, %v1432_v62 }
 0x290   : > { %v385_v26 = vmul.f32 %v1613_v27, %v1434_v18 }
 0x2f2   : > { %v364_v63 = vpop.permute.xlu1 %363 }
 0x2f3   : > { %v366_v17 = vmul.f32 %v1432_v62, %v364_v63  ;;  %v2052_v63 = vld [vmem:[%s2252_s6 + $0x58] sm:$0xff] (%p244_p10) }
 0x2f5   : > { %368 = vrot.lane.b32.xlu0 %v366_v17, %s1661_s28  ;;  %v2057_v17 = vld [vmem:[%s2252_s6 + $0x60] sm:$0xff] (%p244_p10) }
 0x2f6   : > { %v388_v19 = vpop.permute.xlu1 %387 }
 0x2f7   : > { %v390_v21 = vmul.f32 %v1434_v18, %v388_v19  ;;  %v2067_v19 = vld [vmem:[%s2252_s6 + $0x70] sm:$0xff] (%p244_p10) }
 0x2f9   : > { %392 = vrot.lane.b32.xlu1 %v390_v21, %s1661_s28  ;;  %424 = vperm.xlu0 %1421, %v403_v20   ;;  %v2072_v20 = vld [vmem:[%s2252_s6 + $0x78] sm:$0xff] (%p244_p10)  ;;  %v467_v21 = vld [vmem:[%s2253_s7] sm:$0x3] (%p244_p10) }
 0x2fd   : > { %436 = vperm.xlu1 %1422, %v405_v22   ;;  %v472_v22 = vrot.slane (%p244_p10), %v467_v21, %v94_v37 }
 0x367   : > { %v369_v24 = vpop.permute.xlu0 %368 }
 0x368   : > { %v371_v25 = vadd.f32 %v369_v24, %v361_v23  ;;  %v476_v23 = vrot.slane (%p244_p10), %v467_v21, %v98_v39 }
 0x36a   : > { %1435 = vtanh.f32 %v371_v25 }
 0x36b   : > { %v393_v31 = vpop.permute.xlu1 %392 }
 0x36c   : > { %v395_v32 = vadd.f32 %v393_v31, %v385_v26 }
 0x36e   : > { %1437 = vtanh.f32 %v395_v32 }
 0x374   : > { %v1436_v33 = vpop.eup %1435 }
 0x375   : > { %374 = vrot.lane.b32.xlu1 %v1436_v33, %s1661_s28 }
 0x378   : > { %v1438_v38 = vpop.eup %1437  ;;  %v425_v42 = vpop.permute.xlu0 %424 }
 0x379   : > { %410 = vperm.xlu1 %1422, %v408_v34   ;;  %398 = vrot.lane.b32.xlu0 %v1438_v38, %s1661_s28 }
 0x37c   : > { %v437_v41 = vpop.permute.xlu1 %436 }
 0x37d   : > { %417 = vperm.xlu0 %1421, %v415_v40  }
 0x3e7   : > { %v375_v43 = vpop.permute.xlu1 %374 }
 0x3e8   : > { %v377_v44 = vmul.f32 %v1432_v62, %v375_v43  ;;  %v2047_v62 = vld [vmem:[%s2252_s6 + $0x50] sm:$0xff] (%p244_p10) }
 0x3ea   : > { %v427_v45 = vmul.f32 %v425_v42, %v377_v44 }
 0x3eb   : > { %v399_v46 = vpop.permute.xlu0 %398 }
 0x3ec   : > { %v401_v47 = vmul.f32 %v1434_v18, %v399_v46  ;;  %429 = vrot.lane.b32.xlu1 %v427_v45, %s1657_s4  ;;  %v2062_v18 = vld [vmem:[%s2252_s6 + $0x68] sm:$0xff] (%p244_p10) }
 0x3ee   : > { %v439_v48 = vmul.f32 %v437_v41, %v401_v47 }
 0x3f0   : > { %441 = vrot.lane.b32.xlu0 %v439_v48, %s1659_s8 }
 0x3f8   : > { %v411_v49 = vpop.permute.xlu1 %410 }
 0x3f9   : > { %vm412_vm6 = vcmp.eq.s32.totalorder %v411_v49, 1 }
 0x3fa   : > { %v413_v30 = vsel %vm412_vm6, %v377_v44, %v1625_v30   ;;  %v414_v29 = vsel %vm412_vm6, %v371_v25, %v1621_v29  }
 0x3fb   :  { %v1447_v30 = vld [vmem:[#allocation5 + $0x20] ss:$8 sps:$4 sm:$0xff] (%p244_p10)  }
 0x3fc   : > { %v418_v50 = vpop.permute.xlu0 %417  ;;  %537 = vmatpush1.bf16.msra.mxu0 (%p244_p10), %v1447_v30  ;;  %1310 = vmatpush1.bf16.msra.mxu1 (%p244_p10), %v1447_v30  ;;  %v2022_v29 = vld [vmem:[%s2252_s6 + $0x28] sm:$0xff] (%p244_p10) }
 0x3fd   : > { %vm419_vm7 = vcmp.eq.s32.totalorder %v418_v50, 1  ;;  %538 = vmatprep.subr.bf16.mxu0 (%p244_p10), %v1448_v1  ;;  %1307 = vmatprep.subr.bf16.mxu1 (%p244_p10), %v1448_v1 }
 0x3fe   : > { %v420_v28 = vsel %vm419_vm7, %v401_v47, %v1617_v28   ;;  %v421_v27 = vsel %vm419_vm7, %v395_v32, %v1613_v27  }
 0x3ff   :  { %v2012_v27 = vld [vmem:[%s2252_s6 + $0x18] sm:$0xff] (%p244_p10)  ;;  %v2017_v28 = vld [vmem:[%s2252_s6 + $0x20] sm:$0xff] (%p244_p10) }
 0x400   :  { %539 = vmatpush1.bf16.msra.mxu0 (%p244_p10), %v1450_v2  ;;  %1311 = vmatpush1.bf16.msra.mxu1 (%p244_p10), %v1450_v2 }
 0x45d   :  { %246 = sbr.rel (!%p244_p10) target bundleno = 294 (0x126), region = 98 }
 0x45e   : > { %v430_v51 = vpop.permute.xlu1 %429 }
 0x45f   : > { %433 = vst.msk [vmem:[%s432_s26] sm:$0xff] %vm263_vm2, %v430_v51 }
 0x462   : > { %v442_v52 = vpop.permute.xlu0 %441 }
 0x463   : > { %446 = vst.msk [vmem:[%s444_s11] sm:$0xff] %vm445_vm8, %v442_v52 }
 0x46a   :  { %v447_v3 = vld [vmem:[#allocation3] sm:$0xff]  ;;  %v448_v4 = vld [vmem:[#allocation3 + $0x8] sm:$0xff]  ;;  %v449_v9 = vld [vmem:[#allocation3 + $0x10] sm:$0xff] }
 0x46b   :  { %v451_v5 = vld [vmem:[#allocation3 + $0x20] sm:$0xff]  ;;  %v452_v6 = vld [vmem:[#allocation3 + $0x28] sm:$0xff]  ;;  %v455_v7 = vpack.c.bf16 %v448_v4, %v447_v3  ;;  %v450_v10 = vld [vmem:[#allocation3 + $0x18] sm:$0xff]  ;;  %v2081_v3 = vmov 0.0   ;;  %v2083_v4 = vmov 0.0  }
 0x46c   :  { %v457_v8 = vpack.c.bf16 %v452_v6, %v451_v5  ;;  %v453_v11 = vld [vmem:[#allocation3 + $0x30] sm:$0xff]  ;;  %v454_v12 = vld [vmem:[#allocation3 + $0x38] sm:$0xff]  ;;  %v456_v13 = vpack.c.bf16 %v450_v10, %v449_v9  ;;  %v2085_v5 = vmov 0.0   ;;  %v2087_v6 = vmov 0.0  }
 0x46d   :  { %1182 = vmatmul.mubr.msk.bf16.vlgmr.msra.gmra.mrb[0].mxu0 %vm265_vm3, %v455_v7  ;;  %v458_v14 = vpack.c.bf16 %v454_v12, %v453_v11 }
 0x46e   :  { %1184 = vmatmul.mubr.msk.bf16.vlgmr.msra.gmra.mrb[0].mxu1 %vm265_vm3, %v457_v8  ;;  %574 = vmatprep.mubr.bf16.mxu0 %v1656_v0 }
 0x46f   :  { %594 = vmatprep.mubr.bf16.mxu1 %v1656_v0  ;;  %v2007_v0 = vld [vmem:[%s2252_s6 + $0x10] sm:$0xff]  ;;  %s2089_s6 = smov 0  }
 0x475   :  { %1183 = vmatmul.mubr.msk.bf16.gmra.mrb[4].mxu0 %vm265_vm3, %v456_v13 }
 0x476   :  { %1185 = vmatmul.mubr.msk.bf16.gmra.mrb[4].mxu1 %vm265_vm3, %v458_v14 }
 0x540   :  { %v566_v24 = vpop.f32.mrb[0].mxu0 }
 0x541   :  { %v586_v25 = vpop.f32.mrb[0].mxu1  ;;  %v567_v26 = vadd.f32 %v566_v24, %v472_v22  ;;  %v568_v32 = vpop.f32.mrb[1].mxu0 }
 0x542   :  { %v587_v31 = vadd.f32 %v586_v25, %v472_v22  ;;  %v588_v33 = vpop.f32.mrb[1].mxu1  ;;  %v569_v34 = vadd.f32 %v568_v32, %v476_v23  ;;  %v570_v40 = vpop.f32.mrb[2].mxu0 }
 0x543   :  { %v589_v38 = vadd.f32 %v588_v33, %v476_v23  ;;  %v590_v41 = vpop.f32.mrb[2].mxu1  ;;  %605 = vst [vmem:[#allocation2] sm:$0xff] %v567_v26  ;;  %v571_v42 = vadd.f32 %v570_v40, %v472_v22  ;;  %v572_v44 = vpop.f32.mrb[3].mxu0 }
 0x544   :  { %613 = vst [vmem:[#allocation2 + $0x40] sm:$0xff] %v587_v31  ;;  %v591_v43 = vadd.f32 %v590_v41, %v472_v22  ;;  %v592_v45 = vpop.f32.mrb[3].mxu1  ;;  %606 = vst [vmem:[#allocation2 + $0x8] sm:$0xff] %v569_v34  ;;  %v573_v36 = vadd.f32 %v572_v44, %v476_v23 }
 0x545   :  { %614 = vst [vmem:[#allocation2 + $0x48] sm:$0xff] %v589_v38  ;;  %v593_v37 = vadd.f32 %v592_v45, %v476_v23  ;;  %607 = vst [vmem:[#allocation2 + $0x10] sm:$0xff] %v571_v42 }
 0x546   :  { %615 = vst [vmem:[#allocation2 + $0x50] sm:$0xff] %v591_v43  ;;  %608 = vst [vmem:[#allocation2 + $0x18] sm:$0xff] %v573_v36 }
 0x547   :  { %616 = vst [vmem:[#allocation2 + $0x58] sm:$0xff] %v593_v37 }
 0x548   :  { %v576_v39 = vpop.f32.mrb[4].mxu0 }
 0x549   :  { %v596_v46 = vpop.f32.mrb[4].mxu1  ;;  %v577_v47 = vadd.f32 %v576_v39, %v472_v22  ;;  %v578_v49 = vpop.f32.mrb[5].mxu0 }
 0x54a   :  { %v597_v48 = vadd.f32 %v596_v46, %v472_v22  ;;  %v598_v50 = vpop.f32.mrb[5].mxu1  ;;  %v579_v51 = vadd.f32 %v578_v49, %v476_v23  ;;  %v580_v53 = vpop.f32.mrb[6].mxu0 }
 0x54b   :  { %v599_v52 = vadd.f32 %v598_v50, %v476_v23  ;;  %v600_v54 = vpop.f32.mrb[6].mxu1  ;;  %609 = vst [vmem:[#allocation2 + $0x20] sm:$0xff] %v577_v47  ;;  %v581_v55 = vadd.f32 %v580_v53, %v472_v22  ;;  %v582_v57 = vpop.f32.mrb[7].mxu0 }
 0x54c   :  { %617 = vst [vmem:[#allocation2 + $0x60] sm:$0xff] %v597_v48  ;;  %v601_v56 = vadd.f32 %v600_v54, %v472_v22  ;;  %v602_v30 = vpop.f32.mrb[7].mxu1  ;;  %610 = vst [vmem:[#allocation2 + $0x28] sm:$0xff] %v579_v51  ;;  %v583_v1 = vadd.f32 %v582_v57, %v476_v23 }
 0x54d   :  { %618 = vst [vmem:[#allocation2 + $0x68] sm:$0xff] %v599_v52  ;;  %v603_v2 = vadd.f32 %v602_v30, %v476_v23  ;;  %611 = vst [vmem:[#allocation2 + $0x30] sm:$0xff] %v581_v55 }
 0x54e   :  { %619 = vst [vmem:[#allocation2 + $0x70] sm:$0xff] %v601_v56  ;;  %612 = vst [vmem:[#allocation2 + $0x38] sm:$0xff] %v583_v1 }
 0x54f   :  { %620 = vst [vmem:[#allocation2 + $0x78] sm:$0xff] %v603_v2 }
 0x550 LB: > { %v1268_v7 = vpack.c.bf16 %v2012_v27, %v2002_v16  ;;  %v1270_v8 = vpack.c.bf16 %v2007_v0, %v1997_v15  ;;  %v1272_v9 = vpack.c.bf16 %v2032_v59, %v2022_v29  ;;  %s1662_s7 = smov 64   ;;  %v1274_v10 = vpack.c.bf16 %v2027_v58, %v2017_v28  ;;  %s1664_s4 = smov 96   ;;  %s1649_s6 = sphi %s2089_s6, %s642_s6   ;;  %v1645_v6 = vphi %v2087_v6, %v807_v6   ;;  %v1641_v5 = vphi %v2085_v5, %v808_v5   ;;  %v1637_v4 = vphi %v2083_v4, %v814_v4   ;;  %v1633_v3 = vphi %v2081_v3, %v815_v3  }
 0x551   : > { %651 = vrot.lane.b32.xlu0 %v1645_v6, %s1662_s7  ;;  %v1663_v11 = vmov 0.0   ;;  %v1276_v12 = vpack.c.bf16 %v2052_v63, %v2042_v61  ;;  %v1278_v13 = vpack.c.bf16 %v2047_v62, %v2037_v60  ;;  %v1280_v14 = vpack.c.bf16 %v2072_v20, %v2062_v18  ;;  %s648_s8 = ssub.s32 7, %s1649_s6  ;;  %s2130_s14 = sshll.u32 %s1649_s6, 3 }
 0x552   : > { %1269 = vmatprep.subr.bf16.mxu0 %v1268_v7  ;;  %727 = vmatprep.mubr.f32.mxu0 %v1663_v11  ;;  %v1282_v21 = vpack.c.bf16 %v2067_v19, %v2057_v17  ;;  %s2132_s19 = sshll.u32 %s648_s8, 3  ;;  %s734_s20 = sshra.s32 %s2130_s14, 3  ;;  %v1665_v38 = vmov 0  }
 0x553   : > { %1271 = vmatpush1.bf16.msra.mxu0 %v1270_v8  ;;  %s741_s21 = sshra.s32 %s2132_s19, 3  ;;  %s1206_s22 = sshll.u32 %s734_s20, 4  ;;  %1452 = vset.pattern.permute.xlu1 %v1665_v38 }
 0x554   : > { %1273 = vmatprep.subr.bf16.mxu0 %v1272_v9  ;;  %s1207_s23 = sshll.u32 %s741_s21, 4  ;;  %s738_s24 = scalar_lea.vmem [#allocation2], %s1206_s22  ;;  %1451 = vset.pattern.permute.xlu0 %v1665_v38 }
 0x555   : > { %655 = vrot.lane.b32.xlu0 %v1637_v4, %s1664_s4  ;;  %s745_s3 = scalar_lea.vmem [#allocation2], %s1207_s23  ;;  %s1666_s27 = smov 32  }
 0x556   : > { %v739_v25 = vld [vmem:[%s738_s24] sm:$0xff]  ;;  %v746_v31 = vld [vmem:[%s745_s3 + $0x8] sm:$0xff]  ;;  %s796_s30 = scalar_lea.vmem %s2246_s0, %s2130_s14  ;;  %s798_s16 = scalar_lea.vmem %s2246_s0, %s2132_s19 }
 0x557   : > { %1275 = vmatpush1.bf16.msra.mxu0 %v1274_v10  ;;  %v797_v50 = vld [vmem:[%s796_s30] sm:$0xff]  ;;  %s826_s25 = scalar_lea.vmem [#allocation4], %s2130_s14  ;;  %s838_s26 = scalar_lea.vmem [#allocation4], %s2132_s19 }
 0x558   : > { %1277 = vmatprep.subr.bf16.mxu0 %v1276_v12  ;;  %v799_v52 = vld [vmem:[%s798_s16] sm:$0xff]  ;;  %vm800_vm9 = vcmp.gt.f32.partialorder %v797_v50, 0.0  ;;  %s642_s6 = sadd.s32 1, %s1649_s6  }
 0x559   : > { %v802_v2 = vsel %vm800_vm9, 1, %v1665_v38  ;;  %vm801_vm10 = vcmp.gt.f32.partialorder %v799_v52, 0.0  ;;  %p639_p11 = scmp.ge.s32.totalorder %s642_s6, 8  }
 0x55a   : > { %v809_v8 = vsel %vm801_vm10, 1, %v1665_v38  ;;  %v852_v38 = vld [vmem:[#allocation7 + $0x18] sm:$0xff] (%p639_p11)  ;;  %v994_v59 = vand.u32 (%p639_p11), 127, %v92_v35  ;;  %v1195_v60 = vld [vmem:[#allocation9] ss:$0 sm:$0xff] (%p639_p11) }
 0x55b   : > { %1279 = vmatpush1.bf16.msra.mxu0 %v1278_v13 }
 0x55c   : > { %1281 = vmatprep.subr.bf16.mxu0 %v1280_v14  ;;  %vm995_vm13 = vcmp.lt.s32.totalorder (%p639_p11), %v994_v59, 33 }
 0x55f   : > { %1283 = vmatpush1.bf16.msra.mxu0 %v1282_v21 }
 0x5c3   : > { %v652_v22 = vpop.permute.xlu0 %651 }
 0x5c7   : > { %v656_v23 = vpop.permute.xlu0 %655 }
 0x5c8   : > { %v659_v24 = vsel %vm263_vm2, %v652_v22, %v656_v23 }
 0x5c9   : > { %1188 = vmatmul.mubr.msk.f32.vlgmr.msra.gmra.mrb[0].mxu0 %vm265_vm3, %v659_v24 }
 0x69c   : > { %v729_v26 = vpop.f32.mrb[0].mxu0 }
 0x69d   : > { %v740_v32 = vadd.f32 %v739_v25, %v729_v26  ;;  %v731_v33 = vpop.f32.mrb[1].mxu0 }
 0x69e   : > { %v747_v34 = vadd.f32 %v746_v31, %v731_v33  ;;  %v849_v31 = vld [vmem:[#allocation7] sm:$0xff] (%p639_p11)  ;;  %v851_v33 = vld [vmem:[#allocation7 + $0x10] sm:$0xff] (%p639_p11) }
 0x69f   : > { %1453 = vtanh.f32 %v740_v32  ;;  %v1193_v42 = vmul.f32 -1.442695, %v740_v32  ;;  %v850_v32 = vld [vmem:[#allocation7 + $0x8] sm:$0xff] (%p639_p11) }
 0x6a0   : > { %1455 = vtanh.f32 %v747_v34  ;;  %v1194_v43 = vmul.f32 -1.442695, %v747_v34  ;;  %v1284_v34 = vpack.c.bf16 (%p639_p11), %v850_v32, %v849_v31 }
 0x6a1   : > { %1457 = vpow2.f32 %v1193_v42  ;;  %v854_v42 = vld [vmem:[#allocation7 + $0x28] sm:$0xff] (%p639_p11) }
 0x6a2   : > { %1459 = vpow2.f32 %v1194_v43  ;;  %1285 = vmatprep.subr.bf16.mxu0 (%p639_p11), %v1284_v34  ;;  %1312 = vmatprep.subr.bf16.mxu1 (%p639_p11), %v1284_v34 }
 0x6a3   :  { %1287 = vmatpush3.bf16.msra.mxu0 (%p639_p11), %v1284_v34  ;;  %1316 = vmatpush3.bf16.msra.mxu1 (%p639_p11), %v1284_v34 }
 0x6a9   : > { %v1454_v40 = vpop.eup %1453 }
 0x6aa   : > { %757 = vrot.lane.b32.xlu1 %v1454_v40, %s1666_s27  ;;  %v1456_v41 = vpop.eup %1455  ;;  %v1288_v40 = vpack.c.bf16 (%p639_p11), %v852_v38, %v851_v33 }
 0x6ab   : > { %v1458_v44 = vpop.eup %1457 }
 0x6ac   : > { %v751_v45 = vadd.f32 1.0, %v1458_v44  ;;  %v1460_v36 = vpop.eup %1459  ;;  %1289 = vmatprep.subr.bf16.mxu0 (%p639_p11), %v1288_v40  ;;  %1313 = vmatprep.subr.bf16.mxu1 (%p639_p11), %v1288_v40 }
 0x6ad   : > { %v775_v37 = vadd.f32 1.0, %v1460_v36  ;;  %v856_v36 = vld [vmem:[#allocation7 + $0x38] sm:$0xff] (%p639_p11)  ;;  %1291 = vmatpush3.bf16.msra.mxu0 (%p639_p11), %v1288_v40  ;;  %1317 = vmatpush3.bf16.msra.mxu1 (%p639_p11), %v1288_v40 }
 0x6ae   : > { %781 = vrot.lane.b32.xlu1 %v1456_v41, %s1666_s27  ;;  %1461 = vrcp.f32 %v751_v45  ;;  %v853_v41 = vld [vmem:[#allocation7 + $0x20] sm:$0xff] (%p639_p11)  ;;  %v855_v45 = vld [vmem:[#allocation7 + $0x30] sm:$0xff] (%p639_p11) }
 0x6af   : > { %1463 = vrcp.f32 %v775_v37  ;;  %v1296_v15 = vpack.c.bf16 (%p639_p11), %v856_v36, %v855_v45 }
 0x6b8   : > { %v1462_v39 = vpop.eup %1461 }
 0x6b9   : > { %v1464_v48 = vpop.eup %1463  ;;  %v755_v53 = vmul.f32 %v1641_v5, %v1462_v39 }
 0x6ba   : > { %v779_v56 = vmul.f32 %v1633_v3, %v1464_v48 }
 0x71c   : > { %v758_v46 = vpop.permute.xlu1 %757 }
 0x71d   : > { %v760_v47 = vmul.f32 %v1462_v39, %v758_v46 }
 0x71f   : > { %762 = vrot.lane.b32.xlu0 %v760_v47, %s1666_s27 }
 0x720   : > { %v782_v49 = vpop.permute.xlu1 %781 }
 0x721   : > { %v784_v51 = vmul.f32 %v1464_v48, %v782_v49 }
 0x723   : > { %786 = vrot.lane.b32.xlu1 %v784_v51, %s1666_s27  ;;  %818 = vperm.xlu0 %1451, %v797_v50  }
 0x727   : > { %830 = vperm.xlu1 %1452, %v799_v52  }
 0x791   : > { %v763_v54 = vpop.permute.xlu0 %762 }
 0x792   : > { %v765_v55 = vadd.f32 %v763_v54, %v755_v53 }
 0x794   : > { %1465 = vtanh.f32 %v765_v55 }
 0x795   : > { %v787_v57 = vpop.permute.xlu1 %786 }
 0x796   : > { %v789_v30 = vadd.f32 %v787_v57, %v779_v56 }
 0x798   : > { %1467 = vtanh.f32 %v789_v30 }
 0x79e   : > { %v1466_v1 = vpop.eup %1465 }
 0x79f   : > { %768 = vrot.lane.b32.xlu1 %v1466_v1, %s1666_s27 }
 0x7a2   : > { %v1468_v7 = vpop.eup %1467  ;;  %v819_v10 = vpop.permute.xlu0 %818 }
 0x7a3   : > { %804 = vperm.xlu1 %1452, %v802_v2   ;;  %792 = vrot.lane.b32.xlu0 %v1468_v7, %s1666_s27 }
 0x7a6   : > { %v831_v9 = vpop.permute.xlu1 %830 }
 0x7a7   : > { %811 = vperm.xlu0 %1451, %v809_v8  }
 0x811   : > { %v769_v11 = vpop.permute.xlu1 %768 }
 0x812   : > { %v771_v12 = vmul.f32 %v1462_v39, %v769_v11 }
 0x814   : > { %v821_v13 = vmul.f32 %v819_v10, %v771_v12 }
 0x815   : > { %v793_v14 = vpop.permute.xlu0 %792 }
 0x816   : > { %v795_v21 = vmul.f32 %v1464_v48, %v793_v14  ;;  %823 = vrot.lane.b32.xlu1 %v821_v13, %s1662_s7 }
 0x818   : > { %v833_v22 = vmul.f32 %v831_v9, %v795_v21 }
 0x81a   : > { %835 = vrot.lane.b32.xlu0 %v833_v22, %s1664_s4 }
 0x822   : > { %v805_v23 = vpop.permute.xlu1 %804 }
 0x823   : > { %vm806_vm11 = vcmp.eq.s32.totalorder %v805_v23, 1 }
 0x824   : > { %v807_v6 = vsel %vm806_vm11, %v771_v12, %v1645_v6   ;;  %v808_v5 = vsel %vm806_vm11, %v765_v55, %v1641_v5  }
 0x825   :  { %v1292_v6 = vpack.c.bf16 (%p639_p11), %v854_v42, %v853_v41 }
 0x826   : > { %v812_v24 = vpop.permute.xlu0 %811 }
 0x827   : > { %vm813_vm12 = vcmp.eq.s32.totalorder %v812_v24, 1  ;;  %1293 = vmatprep.subr.bf16.mxu0 (%p639_p11), %v1292_v6  ;;  %1314 = vmatprep.subr.bf16.mxu1 (%p639_p11), %v1292_v6 }
 0x828   : > { %v814_v4 = vsel %vm813_vm12, %v795_v21, %v1637_v4   ;;  %v815_v3 = vsel %vm813_vm12, %v789_v30, %v1633_v3   ;;  %1295 = vmatpush3.bf16.msra.mxu0 (%p639_p11), %v1292_v6  ;;  %1318 = vmatpush3.bf16.msra.mxu1 (%p639_p11), %v1292_v6 }
 0x829   :  { %1297 = vmatprep.subr.bf16.mxu0 (%p639_p11), %v1296_v15  ;;  %1315 = vmatprep.subr.bf16.mxu1 (%p639_p11), %v1296_v15 }
 0x82c   :  { %1299 = vmatpush3.bf16.msra.mxu0 (%p639_p11), %v1296_v15  ;;  %1319 = vmatpush3.bf16.msra.mxu1 (%p639_p11), %v1296_v15 }
 0x887   :  { %641 = sbr.rel (!%p639_p11) target bundleno = 1360 (0x550), region = 109 }
 0x888   : > { %v824_v25 = vpop.permute.xlu1 %823 }
 0x889   : > { %827 = vst.msk [vmem:[%s826_s25] sm:$0xff] %vm263_vm2, %v824_v25 }
 0x88c   : > { %v836_v26 = vpop.permute.xlu0 %835 }
 0x88d   : > { %840 = vst.msk [vmem:[%s838_s26] sm:$0xff] %vm445_vm8, %v836_v26 }
 0x894   :  { %v841_v43 = vld [vmem:[#allocation4] sm:$0xff]  ;;  %v842_v16 = vld [vmem:[#allocation4 + $0x8] sm:$0xff]  ;;  %v843_v27 = vld [vmem:[#allocation4 + $0x10] sm:$0xff] }
 0x895   :  { %v845_v44 = vld [vmem:[#allocation4 + $0x20] sm:$0xff]  ;;  %1240 = vmatprep.mubr.msk.f32.mxu0 %vm265_vm3, %v841_v43  ;;  %v846_v0 = vld [vmem:[#allocation4 + $0x28] sm:$0xff]  ;;  %v847_v28 = vld [vmem:[#allocation4 + $0x30] sm:$0xff] }
 0x896   :  { %1246 = vmatprep.mubr.msk.f32.mxu1 %vm265_vm3, %v845_v44  ;;  %1241 = vmatmul.mubr.msk.f32.vlgmr.msra.gmra.mrb[0].mxu0 %vm265_vm3, %v842_v16  ;;  %v844_v29 = vld [vmem:[#allocation4 + $0x18] sm:$0xff] }
 0x897   :  { %1247 = vmatmul.mubr.msk.f32.vlgmr.msra.gmra.mrb[0].mxu1 %vm265_vm3, %v846_v0  ;;  %1243 = vmatprep.mubr.msk.f32.mxu0 %vm265_vm3, %v843_v27  ;;  %v848_v58 = vld [vmem:[#allocation4 + $0x38] sm:$0xff] }
 0x898   :  { %1249 = vmatprep.mubr.msk.f32.mxu1 %vm265_vm3, %v847_v28 }
 0x89a   :  { %1244 = vmatmul.mubr.msk.f32.gmra.mrb[2].mxu0 %vm265_vm3, %v844_v29 }
 0x89b   :  { %1250 = vmatmul.mubr.msk.f32.gmra.mrb[2].mxu1 %vm265_vm3, %v848_v58 }
 0x969   :  { %v1242_v61 = vpop.f32.mrb[0].mxu0 }
 0x96a   :  { %v1248_v62 = vpop.f32.mrb[0].mxu1  ;;  %v960_v63 = vadd.f32 %v1242_v61, %v1195_v60  ;;  %v954_v18 = vpop.f32.mrb[1].mxu0 }
 0x96b   :  { %v980_v17 = vadd.f32 %v1248_v62, %v1195_v60  ;;  %v974_v19 = vpop.f32.mrb[1].mxu1  ;;  %v955_v20 = vadd.f32 %v1195_v60, %v954_v18 }
 0x96c   :  { %v997_v4 = vsel %vm995_vm13, %v960_v63, -1e+30  ;;  %v975_v48 = vadd.f32 %v1195_v60, %v974_v19 }
 0x96d   :  { %v1001_v3 = vsel %vm995_vm13, %v980_v17, -1e+30  ;;  %1006 = vmax.xlane.f32.xlu0 %v997_v4  ;;  %v1245_v5 = vpop.f32.mrb[2].mxu0  ;;  %v996_v50 = vsel %vm995_vm13, %v955_v20, -1e+30 }
 0x96e   :  { %1014 = vmax.xlane.f32.xlu1 %v1001_v3  ;;  %v1251_v37 = vpop.f32.mrb[2].mxu1  ;;  %v970_v39 = vadd.f32 %v1245_v5, %v1195_v60  ;;  %v964_v46 = vpop.f32.mrb[3].mxu0  ;;  %v1000_v54 = vsel %vm995_vm13, %v975_v48, -1e+30 }
 0x96f   :  { %v984_v35 = vpop.f32.mrb[3].mxu1  ;;  %v965_v47 = vadd.f32 %v1195_v60, %v964_v46  ;;  %v990_v51 = vadd.f32 %v1251_v37, %v1195_v60 }
 0x970   :  { %v999_v49 = vsel %vm995_vm13, %v970_v39, -1e+30  ;;  %v985_v52 = vadd.f32 %v1195_v60, %v984_v35 }
 0x971   :  { %1004 = vmax.xlane.f32.xlu0 %v996_v50  ;;  %v998_v53 = vsel %vm995_vm13, %v965_v47, -1e+30  ;;  %v1003_v55 = vsel %vm995_vm13, %v990_v51, -1e+30 }
 0x972   :  { %1010 = vmax.xlane.f32.xlu1 %v999_v49  ;;  %v1002_v56 = vsel %vm995_vm13, %v985_v52, -1e+30 }
 0x975   :  { %1012 = vmax.xlane.f32.xlu0 %v1000_v54 }
 0x976   :  { %1008 = vmax.xlane.f32.xlu1 %v998_v53 }
 0x979   :  { %1016 = vmax.xlane.f32.xlu0 %v1002_v56 }
 0x97a   :  { %1018 = vmax.xlane.f32.xlu1 %v1003_v55 }
 0x9fa   :  { %v1007_v30 = vpop.xlane.xlu0 %1006 }
 0x9fb   :  { %v1015_v57 = vpop.xlane.xlu1 %1014  ;;  %v2192_v2 = vsub.f32 %v997_v4, %v1007_v30 }
 0x9fc   :  { %v2190_v1 = vsub.f32 %v1001_v3, %v1015_v57 }
 0x9fd   :  { %v1030_v7 = vmul.f32 1.442695, %v2192_v2 }
 0x9fe   :  { %v1005_v9 = vpop.xlane.xlu0 %1004  ;;  %v1038_v10 = vmul.f32 1.442695, %v2190_v1 }
 0x9ff   :  { %v1011_v8 = vpop.xlane.xlu1 %1010  ;;  %v2198_v12 = vsub.f32 %v996_v50, %v1005_v9  ;;  %1469 = vpow2.f32 %v1030_v7 }
 0xa00   :  { %v2196_v11 = vsub.f32 %v999_v49, %v1011_v8  ;;  %1471 = vpow2.f32 %v1038_v10 }
 0xa01   :  { %v1028_v13 = vmul.f32 1.442695, %v2198_v12 }
 0xa02   :  { %v1013_v21 = vpop.xlane.xlu0 %1012  ;;  %v1034_v22 = vmul.f32 1.442695, %v2196_v11 }
 0xa03   :  { %v1009_v14 = vpop.xlane.xlu1 %1008  ;;  %v2202_v23 = vsub.f32 %v1000_v54, %v1013_v21  ;;  %1473 = vpow2.f32 %v1028_v13 }
 0xa04   :  { %v2204_v24 = vsub.f32 %v998_v53, %v1009_v14  ;;  %1475 = vpow2.f32 %v1034_v22 }
 0xa05   :  { %v1036_v25 = vmul.f32 1.442695, %v2202_v23 }
 0xa06   :  { %v1017_v31 = vpop.xlane.xlu0 %1016  ;;  %v1032_v33 = vmul.f32 1.442695, %v2204_v24 }
 0xa07   :  { %v1019_v26 = vpop.xlane.xlu1 %1018  ;;  %1477 = vpow2.f32 %v1036_v25  ;;  %v2210_v34 = vsub.f32 %v1002_v56, %v1017_v31 }
 0xa08   :  { %v2207_v32 = vsub.f32 %v1003_v55, %v1019_v26 }
 0xa09   :  { %v1470_v40 = vpop.eup %1469  ;;  %v1040_v41 = vmul.f32 1.442695, %v2210_v34 }
 0xa0a   :  { %v1042_v38 = vmul.f32 1.442695, %v2207_v32  ;;  %1046 = vadd.xlane.f32.xlu1 %v1470_v40  ;;  %v1472_v42 = vpop.eup %1471 }
 0xa0c   :  { %1479 = vpow2.f32 %v1042_v38 }
 0xa0d   :  { %1481 = vpow2.f32 %v1032_v33  ;;  %v1474_v43 = vpop.eup %1473 }
 0xa0e   :  { %1054 = vadd.xlane.f32.xlu1 %v1472_v42  ;;  %1044 = vadd.xlane.f32.xlu0 %v1474_v43  ;;  %1483 = vpow2.f32 %v1040_v41  ;;  %v1476_v44 = vpop.eup %1475 }
 0xa11   :  { %v1478_v6 = vpop.eup %1477 }
 0xa12   :  { %1050 = vadd.xlane.f32.xlu1 %v1476_v44  ;;  %1052 = vadd.xlane.f32.xlu0 %v1478_v6 }
 0xa16   :  { %v1480_v45 = vpop.eup %1479 }
 0xa17   :  { %v1482_v36 = vpop.eup %1481  ;;  %1058 = vadd.xlane.f32.xlu1 %v1480_v45 }
 0xa18   :  { %1048 = vadd.xlane.f32.xlu0 %v1482_v36  ;;  %v1484_v15 = vpop.eup %1483 }
 0xa1c   :  { %1056 = vadd.xlane.f32.xlu0 %v1484_v15 }
 0xa97   :  { %v1047_v16 = vpop.xlane.xlu1 %1046 }
 0xa98   :  { %1485 = vlog2.f32 %v1047_v16 }
 0xa9b   :  { %v1055_v0 = vpop.xlane.xlu1 %1054  ;;  %v1045_v27 = vpop.xlane.xlu0 %1044 }
 0xa9c   :  { %1487 = vlog2.f32 %v1055_v0 }
 0xa9d   :  { %1489 = vlog2.f32 %v1045_v27 }
 0xa9f   :  { %v1051_v28 = vpop.xlane.xlu1 %1050  ;;  %v1053_v29 = vpop.xlane.xlu0 %1052 }
 0xaa0   :  { %1491 = vlog2.f32 %v1051_v28 }
 0xaa1   :  { %1493 = vlog2.f32 %v1053_v29 }
 0xaa2   :  { %v1486_v58 = vpop.eup %1485 }
 0xaa3   :  { %v1063_v59 = vmul.f32 0.6931472, %v1486_v58 }
 0xaa4   :  { %v1059_v60 = vpop.xlane.xlu1 %1058 }
 0xaa5   :  { %v1049_v61 = vpop.xlane.xlu0 %1048  ;;  %1495 = vlog2.f32 %v1059_v60  ;;  %v1077_v62 = vsub.f32 %v2192_v2, %v1063_v59 }
 0xaa6   :  { %1497 = vlog2.f32 %v1049_v61  ;;  %v1488_v63 = vpop.eup %1487 }
 0xaa7   :  { %v1490_v17 = vpop.eup %1489  ;;  %1085 = vst [vmem:[%s2256_s10 + $0x8] sm:$0xff] %v1077_v62  ;;  %v1071_v18 = vmul.f32 0.6931472, %v1488_v63 }
 0xaa8   :  { %v1061_v20 = vmul.f32 0.6931472, %v1490_v17 }
 0xaa9   :  { %v1057_v19 = vpop.xlane.xlu0 %1056  ;;  %v1081_v3 = vsub.f32 %v2190_v1, %v1071_v18 }
 0xaaa   :  { %1499 = vlog2.f32 %v1057_v19  ;;  %v1492_v4 = vpop.eup %1491  ;;  %v1076_v5 = vsub.f32 %v2198_v12, %v1061_v20 }
 0xaab   :  { %v1494_v37 = vpop.eup %1493  ;;  %1089 = vst [vmem:[%s2256_s10 + $0x28] sm:$0xff] %v1081_v3  ;;  %v1067_v39 = vmul.f32 0.6931472, %v1492_v4 }
 0xaac   :  { %1084 = vst [vmem:[%s2256_s10] sm:$0xff] %v1076_v5  ;;  %v1069_v46 = vmul.f32 0.6931472, %v1494_v37 }
 0xaad   :  { %v1079_v35 = vsub.f32 %v2196_v11, %v1067_v39 }
 0xaae   :  { %v1080_v48 = vsub.f32 %v2202_v23, %v1069_v46 }
 0xaaf   :  { %v1496_v47 = vpop.eup %1495  ;;  %1087 = vst [vmem:[%s2256_s10 + $0x18] sm:$0xff] %v1079_v35 }
 0xab0   :  { %v1498_v49 = vpop.eup %1497  ;;  %v1075_v50 = vmul.f32 0.6931472, %v1496_v47  ;;  %1088 = vst [vmem:[%s2256_s10 + $0x20] sm:$0xff] %v1080_v48 }
 0xab1   :  { %v1065_v51 = vmul.f32 0.6931472, %v1498_v49 }
 0xab2   :  { %v1083_v52 = vsub.f32 %v2207_v32, %v1075_v50 }
 0xab3   :  { %v1078_v54 = vsub.f32 %v2204_v24, %v1065_v51 }
 0xab4   :  { %v1500_v53 = vpop.eup %1499  ;;  %1091 = vst [vmem:[%s2256_s10 + $0x38] sm:$0xff] %v1083_v52 }
 0xab5   :  { %v1073_v55 = vmul.f32 0.6931472, %v1500_v53  ;;  %1086 = vst [vmem:[%s2256_s10 + $0x10] sm:$0xff] %v1078_v54 }
 0xab7   :  { %v1082_v56 = vsub.f32 %v2210_v34, %v1073_v55 }
 0xab9   :  { %1090 = vst [vmem:[%s2256_s10 + $0x30] sm:$0xff] %v1082_v56 }
 0xaba   :  { %1096 = vsyncpa [#allocation6], 1 }
 0xabb   :  { %1097 = vsyncpa [#allocation8], 1 }

</bundles_post_ra>
